<compile_context>
chip_gen: v5e
topology: v5e:2x2
jax: 0.10.0
libtpu: 0.0.40
codegen_flags: <defaults>
</compile_context>

<pallas_src>
import functools

import jax
import jax.numpy as jnp
from jax.experimental import pallas as pl
from jax.experimental.pallas import tpu as pltpu


# --------------------------------------------------------------------------
# Pallas kernel: single-tile  (patches @ W) + bias + activation.
# --------------------------------------------------------------------------
def _make_matmul_bias_act_kernel(act):
    def kernel(p_ref, w_ref, b_ref, o_ref):
        # bf16 x bf16 -> f32 accumulation on the MXU.
        y = jnp.dot(p_ref[...], w_ref[...], preferred_element_type=jnp.float32)
        y = y + b_ref[...]                       # folded-BN shift (f32)
        if act == "leaky_relu":
            y = jnp.maximum(y, 0.2 * y)          # LeakyReLU(0.2): vmul + vmax
        elif act == "sigmoid":
            y = 1.0 / (1.0 + jnp.exp(-y))        # exact sigmoid on final logits
        o_ref[...] = y.astype(o_ref.dtype)

    return kernel


def fused_conv_matmul(patches, w_mat, shift, act, out_dtype):
    """patches: (M, K) bf16, w_mat: (K, Cout) bf16 (BN scale pre-folded),
    shift: (1, Cout) f32. Returns (M, Cout) in out_dtype."""
    M, K = patches.shape
    Cout = w_mat.shape[1]
    vmem = lambda: pl.BlockSpec(memory_space=pltpu.MemorySpace.VMEM)
    return pl.pallas_call(
        _make_matmul_bias_act_kernel(act),
        out_shape=jax.ShapeDtypeStruct((M, Cout), out_dtype),
        in_specs=[vmem(), vmem(), vmem()],
        out_specs=vmem(),
    )(patches, w_mat, shift)


# --------------------------------------------------------------------------
# Plain-JAX glue: im2col patch extraction (layout plumbing only).
# Ordering of the patch feature axis is (kh slowest, kw, cin fastest), which
# the weight reshape below matches exactly.
# --------------------------------------------------------------------------
def extract_patches(x_nhwc, k, stride, pad):
    N, H, W, C = x_nhwc.shape
    xp = jnp.pad(x_nhwc, ((0, 0), (pad, pad), (pad, pad), (0, 0)))
    OH = (H + 2 * pad - k) // stride + 1
    OW = (W + 2 * pad - k) // stride + 1
    cols = []
    for i in range(k):
        for j in range(k):
            cols.append(xp[:, i:i + stride * OH:stride, j:j + stride * OW:stride, :])
    patches = jnp.stack(cols, axis=3).reshape(N, OH, OW, k * k * C)
    return patches, OH, OW


def conv_block(x_nhwc, w_oihw, scale, shift, stride, pad, act, out_dtype):
    """One Conv2d(k=4, bias=False) [+ folded BN] [+ activation]."""
    N, H, W, Cin = x_nhwc.shape
    Cout, Cin_w, kh, kw = w_oihw.shape
    assert Cin_w == Cin
    patches, OH, OW = extract_patches(x_nhwc, kh, stride, pad)
    # PyTorch weight (Cout, Cin, kh, kw) -> (kh*kw*Cin, Cout), matching the
    # (kh, kw, cin) patch ordering. Fold BN scale in f32, then cast to bf16.
    w_mat = jnp.transpose(w_oihw, (2, 3, 1, 0)).reshape(kh * kw * Cin, Cout)
    w_mat = (w_mat * scale[None, :]).astype(jnp.bfloat16)
    out = fused_conv_matmul(
        patches.reshape(N * OH * OW, kh * kw * Cin),
        w_mat,
        shift.reshape(1, Cout).astype(jnp.float32),
        act,
        out_dtype,
    )
    return out.reshape(N, OH, OW, Cout)


# --------------------------------------------------------------------------
# Parameter initialization (deterministic, DCGAN-style, eval-mode BN folded)
# --------------------------------------------------------------------------
def init_params(key, input_nc, target_nc, ndf):
    cin0 = input_nc + target_nc
    conv_shapes = [
        (ndf, cin0, 4, 4),
        (ndf * 2, ndf, 4, 4),
        (ndf * 4, ndf * 2, 4, 4),
        (ndf * 8, ndf * 4, 4, 4),
        (1, ndf * 8, 4, 4),
    ]
    bn_channels = [None, ndf * 2, ndf * 4, ndf * 8, None]
    eps = 1e-5

    params = []
    for shape, bn_c in zip(conv_shapes, bn_channels):
        key, kw_, kg, kb, km = jax.random.split(key, 5)
        w = 0.02 * jax.random.normal(kw_, shape, dtype=jnp.float32)
        cout = shape[0]
        if bn_c is None:
            scale = jnp.ones((cout,), jnp.float32)
            shift = jnp.zeros((cout,), jnp.float32)
        else:
            gamma = 1.0 + 0.02 * jax.random.normal(kg, (bn_c,), dtype=jnp.float32)
            beta = 0.02 * jax.random.normal(kb, (bn_c,), dtype=jnp.float32)
            running_mean = 0.1 * jax.random.normal(km, (bn_c,), dtype=jnp.float32)
            running_var = jnp.ones((bn_c,), jnp.float32)
            scale = gamma / jnp.sqrt(running_var + eps)
            shift = beta - running_mean * scale
        params.append((w, scale, shift))
    return params


# --------------------------------------------------------------------------
# _netD forward
# --------------------------------------------------------------------------
def netD_forward(params, inp_nchw, tgt_nchw):
    x = jnp.concatenate([inp_nchw, tgt_nchw], axis=1)        # cat on channel axis
    x = jnp.transpose(x, (0, 2, 3, 1)).astype(jnp.bfloat16)  # NCHW -> NHWC, bf16

    strides = [2, 2, 2, 1, 1]
    acts = ["leaky_relu", "leaky_relu", "leaky_relu", "leaky_relu", "sigmoid"]
    n_layers = len(params)
    for idx, ((w, scale, shift), s, act) in enumerate(zip(params, strides, acts)):
        # bf16 intermediates (halves inter-layer HBM traffic); f32 final logits.
        out_dtype = jnp.float32 if idx == n_layers - 1 else jnp.bfloat16
        x = conv_block(x, w, scale, shift, stride=s, pad=1, act=act,
                       out_dtype=out_dtype)

    return jnp.transpose(x, (0, 3, 1, 2))                     # NHWC -> NCHW


if __name__ == "__main__":
    input_nc, target_nc, ndf = 2, 2, 8
    N, H, W = 2, 32, 32

    key = jax.random.PRNGKey(0)
    key, k_in, k_tg = jax.random.split(key, 3)
    inp = jax.random.normal(k_in, (N, input_nc, H, W), dtype=jnp.float32)
    tgt = jax.random.normal(k_tg, (N, target_nc, H, W), dtype=jnp.float32)

    params = init_params(key, input_nc, target_nc, ndf)

    fwd = jax.jit(functools.partial(netD_forward, params))
    out = fwd(inp, tgt)
    out = jax.block_until_ready(out)

    # Expected: (2, 1, 2, 2), values in (0, 1) from the final sigmoid.
    assert out.shape == (N, 1, 2, 2), out.shape
    assert bool(jnp.all((out > 0.0) & (out < 1.0)))
    print("KERNEL_OK")
</pallas_src>

<mosaic_0001>
module attributes {stable_mosaic.version = 11 : i64} {
  func.func @kernel(%arg0: memref<512x64xbf16, #tpu.memory_space<vmem>>, %arg1: memref<64x8xbf16, #tpu.memory_space<vmem>>, %arg2: memref<1x8xf32, #tpu.memory_space<vmem>>, %arg3: memref<512x8xbf16, #tpu.memory_space<vmem>>) attributes {dimension_semantics = [], scalar_prefetch = 0 : i64, scratch_operands = 0 : i64, tpu.core_type = #tpu.core_type<tc>} {
    %c0 = arith.constant 0 : index
    %c0_0 = arith.constant 0 : index
    %0 = vector.load %arg0[%c0, %c0_0] : memref<512x64xbf16, #tpu.memory_space<vmem>>, vector<512x64xbf16>
    %c0_1 = arith.constant 0 : index
    %c0_2 = arith.constant 0 : index
    %1 = vector.load %arg1[%c0_1, %c0_2] : memref<64x8xbf16, #tpu.memory_space<vmem>>, vector<64x8xbf16>
    %cst = arith.constant dense<0.000000e+00> : vector<512x8xf32>
    %2 = tpu.matmul %0, %1, %cst {dimension_numbers = #tpu.dot_dimension_numbers<[1], [0], [0], [1], [0, 0, 1, 1], [], []>} : vector<512x64xbf16>, vector<64x8xbf16>, vector<512x8xf32> -> vector<512x8xf32>
    %c0_3 = arith.constant 0 : index
    %c0_4 = arith.constant 0 : index
    %3 = vector.load %arg2[%c0_3, %c0_4] : memref<1x8xf32, #tpu.memory_space<vmem>>, vector<1x8xf32>
    %4 = vector.broadcast %3 : vector<1x8xf32> to vector<512x8xf32>
    %5 = arith.addf %2, %4 : vector<512x8xf32>
    %cst_5 = arith.constant 2.000000e-01 : f32
    %6 = vector.broadcast %cst_5 : f32 to vector<512x8xf32>
    %7 = arith.mulf %6, %5 : vector<512x8xf32>
    %8 = arith.maximumf %5, %7 : vector<512x8xf32>
    %9 = arith.truncf %8 : vector<512x8xf32> to vector<512x8xbf16>
    %c0_6 = arith.constant 0 : index
    %c0_7 = arith.constant 0 : index
    %10 = vector.load %arg3[%c0_6, %c0_7] : memref<512x8xbf16, #tpu.memory_space<vmem>>, vector<512x8xbf16>
    tpu.vector_store %arg3[%c0_6, %c0_7], %9 {strides = array<i32>} : memref<512x8xbf16, #tpu.memory_space<vmem>>, vector<512x8xbf16>,
    return
  }
}

module attributes {stable_mosaic.version = 11 : i64} {
  func.func @kernel(%arg0: memref<128x128xbf16, #tpu.memory_space<vmem>>, %arg1: memref<128x16xbf16, #tpu.memory_space<vmem>>, %arg2: memref<1x16xf32, #tpu.memory_space<vmem>>, %arg3: memref<128x16xbf16, #tpu.memory_space<vmem>>) attributes {dimension_semantics = [], scalar_prefetch = 0 : i64, scratch_operands = 0 : i64, tpu.core_type = #tpu.core_type<tc>} {
    %c0 = arith.constant 0 : index
    %c0_0 = arith.constant 0 : index
    %0 = vector.load %arg0[%c0, %c0_0] : memref<128x128xbf16, #tpu.memory_space<vmem>>, vector<128x128xbf16>
    %c0_1 = arith.constant 0 : index
    %c0_2 = arith.constant 0 : index
    %1 = vector.load %arg1[%c0_1, %c0_2] : memref<128x16xbf16, #tpu.memory_space<vmem>>, vector<128x16xbf16>
    %cst = arith.constant dense<0.000000e+00> : vector<128x16xf32>
    %2 = tpu.matmul %0, %1, %cst {dimension_numbers = #tpu.dot_dimension_numbers<[1], [0], [0], [1], [0, 0, 1, 1], [], []>} : vector<128x128xbf16>, vector<128x16xbf16>, vector<128x16xf32> -> vector<128x16xf32>
    %c0_3 = arith.constant 0 : index
    %c0_4 = arith.constant 0 : index
    %3 = vector.load %arg2[%c0_3, %c0_4] : memref<1x16xf32, #tpu.memory_space<vmem>>, vector<1x16xf32>
    %4 = vector.broadcast %3 : vector<1x16xf32> to vector<128x16xf32>
    %5 = arith.addf %2, %4 : vector<128x16xf32>
    %cst_5 = arith.constant 2.000000e-01 : f32
    %6 = vector.broadcast %cst_5 : f32 to vector<128x16xf32>
    %7 = arith.mulf %6, %5 : vector<128x16xf32>
    %8 = arith.maximumf %5, %7 : vector<128x16xf32>
    %9 = arith.truncf %8 : vector<128x16xf32> to vector<128x16xbf16>
    %c0_6 = arith.constant 0 : index
    %c0_7 = arith.constant 0 : index
    %10 = vector.load %arg3[%c0_6, %c0_7] : memref<128x16xbf16, #tpu.memory_space<vmem>>, vector<128x16xbf16>
    tpu.vector_store %arg3[%c0_6, %c0_7], %9 {strides = array<i32>} : memref<128x16xbf16, #tpu.memory_space<vmem>>, vector<128x16xbf16>,
    return
  }
}

module attributes {stable_mosaic.version = 11 : i64} {
  func.func @kernel(%arg0: memref<32x256xbf16, #tpu.memory_space<vmem>>, %arg1: memref<256x32xbf16, #tpu.memory_space<vmem>>, %arg2: memref<1x32xf32, #tpu.memory_space<vmem>>, %arg3: memref<32x32xbf16, #tpu.memory_space<vmem>>) attributes {dimension_semantics = [], scalar_prefetch = 0 : i64, scratch_operands = 0 : i64, tpu.core_type = #tpu.core_type<tc>} {
    %c0 = arith.constant 0 : index
    %c0_0 = arith.constant 0 : index
    %0 = vector.load %arg0[%c0, %c0_0] : memref<32x256xbf16, #tpu.memory_space<vmem>>, vector<32x256xbf16>
    %c0_1 = arith.constant 0 : index
    %c0_2 = arith.constant 0 : index
    %1 = vector.load %arg1[%c0_1, %c0_2] : memref<256x32xbf16, #tpu.memory_space<vmem>>, vector<256x32xbf16>
    %cst = arith.constant dense<0.000000e+00> : vector<32x32xf32>
    %2 = tpu.matmul %0, %1, %cst {dimension_numbers = #tpu.dot_dimension_numbers<[1], [0], [0], [1], [0, 0, 1, 1], [], []>} : vector<32x256xbf16>, vector<256x32xbf16>, vector<32x32xf32> -> vector<32x32xf32>
    %c0_3 = arith.constant 0 : index
    %c0_4 = arith.constant 0 : index
    %3 = vector.load %arg2[%c0_3, %c0_4] : memref<1x32xf32, #tpu.memory_space<vmem>>, vector<1x32xf32>
    %4 = vector.broadcast %3 : vector<1x32xf32> to vector<32x32xf32>
    %5 = arith.addf %2, %4 : vector<32x32xf32>
    %cst_5 = arith.constant 2.000000e-01 : f32
    %6 = vector.broadcast %cst_5 : f32 to vector<32x32xf32>
    %7 = arith.mulf %6, %5 : vector<32x32xf32>
    %8 = arith.maximumf %5, %7 : vector<32x32xf32>
    %9 = arith.truncf %8 : vector<32x32xf32> to vector<32x32xbf16>
    %c0_6 = arith.constant 0 : index
    %c0_7 = arith.constant 0 : index
    %10 = vector.load %arg3[%c0_6, %c0_7] : memref<32x32xbf16, #tpu.memory_space<vmem>>, vector<32x32xbf16>
    tpu.vector_store %arg3[%c0_6, %c0_7], %9 {strides = array<i32>} : memref<32x32xbf16, #tpu.memory_space<vmem>>, vector<32x32xbf16>,
    return
  }
}

module attributes {stable_mosaic.version = 11 : i64} {
  func.func @kernel(%arg0: memref<18x512xbf16, #tpu.memory_space<vmem>>, %arg1: memref<512x64xbf16, #tpu.memory_space<vmem>>, %arg2: memref<1x64xf32, #tpu.memory_space<vmem>>, %arg3: memref<18x64xbf16, #tpu.memory_space<vmem>>) attributes {dimension_semantics = [], scalar_prefetch = 0 : i64, scratch_operands = 0 : i64, tpu.core_type = #tpu.core_type<tc>} {
    %c0 = arith.constant 0 : index
    %c0_0 = arith.constant 0 : index
    %0 = vector.load %arg0[%c0, %c0_0] : memref<18x512xbf16, #tpu.memory_space<vmem>>, vector<18x512xbf16>
    %c0_1 = arith.constant 0 : index
    %c0_2 = arith.constant 0 : index
    %1 = vector.load %arg1[%c0_1, %c0_2] : memref<512x64xbf16, #tpu.memory_space<vmem>>, vector<512x64xbf16>
    %cst = arith.constant dense<0.000000e+00> : vector<18x64xf32>
    %2 = tpu.matmul %0, %1, %cst {dimension_numbers = #tpu.dot_dimension_numbers<[1], [0], [0], [1], [0, 0, 1, 1], [], []>} : vector<18x512xbf16>, vector<512x64xbf16>, vector<18x64xf32> -> vector<18x64xf32>
    %c0_3 = arith.constant 0 : index
    %c0_4 = arith.constant 0 : index
    %3 = vector.load %arg2[%c0_3, %c0_4] : memref<1x64xf32, #tpu.memory_space<vmem>>, vector<1x64xf32>
    %4 = vector.broadcast %3 : vector<1x64xf32> to vector<18x64xf32>
    %5 = arith.addf %2, %4 : vector<18x64xf32>
    %cst_5 = arith.constant 2.000000e-01 : f32
    %6 = vector.broadcast %cst_5 : f32 to vector<18x64xf32>
    %7 = arith.mulf %6, %5 : vector<18x64xf32>
    %8 = arith.maximumf %5, %7 : vector<18x64xf32>
    %9 = arith.truncf %8 : vector<18x64xf32> to vector<18x64xbf16>
    %c0_6 = arith.constant 0 : index
    %c0_7 = arith.constant 0 : index
    %10 = vector.load %arg3[%c0_6, %c0_7] : memref<18x64xbf16, #tpu.memory_space<vmem>>, vector<18x64xbf16>
    tpu.vector_store %arg3[%c0_6, %c0_7], %9 {strides = array<i32>} : memref<18x64xbf16, #tpu.memory_space<vmem>>, vector<18x64xbf16>,
    return
  }
}

module attributes {stable_mosaic.version = 11 : i64} {
  func.func @kernel(%arg0: memref<8x1024xbf16, #tpu.memory_space<vmem>>, %arg1: memref<1024x1xbf16, #tpu.memory_space<vmem>>, %arg2: memref<1x1xf32, #tpu.memory_space<vmem>>, %arg3: memref<8x1xf32, #tpu.memory_space<vmem>>) attributes {dimension_semantics = [], scalar_prefetch = 0 : i64, scratch_operands = 0 : i64, tpu.core_type = #tpu.core_type<tc>} {
    %c0 = arith.constant 0 : index
    %c0_0 = arith.constant 0 : index
    %0 = vector.load %arg0[%c0, %c0_0] : memref<8x1024xbf16, #tpu.memory_space<vmem>>, vector<8x1024xbf16>
    %c0_1 = arith.constant 0 : index
    %c0_2 = arith.constant 0 : index
    %1 = vector.load %arg1[%c0_1, %c0_2] : memref<1024x1xbf16, #tpu.memory_space<vmem>>, vector<1024x1xbf16>
    %cst = arith.constant dense<0.000000e+00> : vector<8x1xf32>
    %2 = tpu.matmul %0, %1, %cst {dimension_numbers = #tpu.dot_dimension_numbers<[1], [0], [0], [1], [0, 0, 1, 1], [], []>} : vector<8x1024xbf16>, vector<1024x1xbf16>, vector<8x1xf32> -> vector<8x1xf32>
    %c0_3 = arith.constant 0 : index
    %c0_4 = arith.constant 0 : index
    %3 = vector.load %arg2[%c0_3, %c0_4] : memref<1x1xf32, #tpu.memory_space<vmem>>, vector<1x1xf32>
    %4 = vector.broadcast %3 : vector<1x1xf32> to vector<8x1xf32>
    %5 = arith.addf %2, %4 : vector<8x1xf32>
    %cst_5 = arith.constant 0.000000e+00 : f32
    %6 = vector.broadcast %cst_5 : f32 to vector<8x1xf32>
    %7 = arith.subf %6, %5 : vector<8x1xf32>
    %8 = math.exp %7 : vector<8x1xf32>
    %cst_6 = arith.constant 1.000000e+00 : f32
    %9 = vector.broadcast %cst_6 : f32 to vector<8x1xf32>
    %10 = arith.addf %9, %8 : vector<8x1xf32>
    %cst_7 = arith.constant 1.000000e+00 : f32
    %11 = vector.broadcast %cst_7 : f32 to vector<8x1xf32>
    %12 = arith.divf %11, %10 : vector<8x1xf32>
    %c0_8 = arith.constant 0 : index
    %c0_9 = arith.constant 0 : index
    %13 = vector.load %arg3[%c0_8, %c0_9] : memref<8x1xf32, #tpu.memory_space<vmem>>, vector<8x1xf32>
    tpu.vector_store %arg3[%c0_8, %c0_9], %12 {strides = array<i32>} : memref<8x1xf32, #tpu.memory_space<vmem>>, vector<8x1xf32>,
    return
  }
}

</mosaic_0001>

<bundles_post_ra>
// kernel: netD_forward.5
= control target key start
LH: loop header
LB: loop body
LE: loop exit
PB: predicated region body
PF: predicated region fallthrough
CT: control target
= control target key end

     0   :  { %vm275_vm0 = vcmask 523264   ;;  %vm733_vm1 = vcmask 60416   ;;  %s1512_s1 = inlined_call_operand.vmem [shape: bf16[64,8], index: 1, kind: input, shape index: {}]   ;;  %s1513_s2 = inlined_call_operand.vmem [shape: f32[1,8], index: 2, kind: input, shape index: {}]   ;;  %s1514_s0 = inlined_call_operand.vmem [shape: bf16[512,64], index: 0, kind: input, shape index: {}]   ;;  %s1515_s3 = inlined_call_operand.vmem [shape: bf16[512,8], index: 3, kind: output, shape index: {}]  }
   0x1   :  { %v1013_v0 = vld [vmem:[%s1512_s1 + $0x18] sm:$0xff]  ;;  %v1012_v1 = vld [vmem:[%s1512_s1 + $0x10] sm:$0xff]  ;;  %v1011_v2 = vld [vmem:[%s1512_s1 + $0x8] sm:$0xff] }
   0x2   :  { %376 = vmatpush.bf16.msra.mxu0 %v1013_v0  ;;  %1014 = vmatpush.bf16.msra.mxu1 %v1013_v0  ;;  %v1010_v3 = vld [vmem:[%s1512_s1] sm:$0xff]  ;;  %v979_v8 = vld [vmem:[%s1514_s0 + $0x8] sm:$0xff]  ;;  %v980_v12 = vld [vmem:[%s1514_s0 + $0x10] sm:$0xff] }
   0x3   :  { %1015 = vmatpush.bf16.msra.mxu2 %v1013_v0  ;;  %1016 = vmatpush.bf16.msra.mxu3 %v1013_v0  ;;  %v978_v4 = vld [vmem:[%s1514_s0] sm:$0xff]  ;;  %v987_v9 = vld [vmem:[%s1514_s0 + $0x48] sm:$0xff]  ;;  %v988_v13 = vld [vmem:[%s1514_s0 + $0x50] sm:$0xff] }
   0x4   :  { %v986_v5 = vld [vmem:[%s1514_s0 + $0x40] sm:$0xff]  ;;  %v995_v10 = vld [vmem:[%s1514_s0 + $0x88] sm:$0xff]  ;;  %v996_v14 = vld [vmem:[%s1514_s0 + $0x90] sm:$0xff] }
   0x5   :  { %v994_v6 = vld [vmem:[%s1514_s0 + $0x80] sm:$0xff]  ;;  %v1003_v11 = vld [vmem:[%s1514_s0 + $0xc8] sm:$0xff]  ;;  %v1004_v15 = vld [vmem:[%s1514_s0 + $0xd0] sm:$0xff] }
   0x6   :  { %377 = vmatpush.bf16.msra.mxu0 %v1012_v1  ;;  %1017 = vmatpush.bf16.msra.mxu1 %v1012_v1  ;;  %v1002_v7 = vld [vmem:[%s1514_s0 + $0xc0] sm:$0xff]  ;;  %v981_v16 = vld [vmem:[%s1514_s0 + $0x18] sm:$0xff]  ;;  %v983_v24 = vld [vmem:[%s1514_s0 + $0x28] sm:$0xff] }
   0x7   :  { %1018 = vmatpush.bf16.msra.mxu2 %v1012_v1  ;;  %1019 = vmatpush.bf16.msra.mxu3 %v1012_v1  ;;  %v989_v17 = vld [vmem:[%s1514_s0 + $0x58] sm:$0xff]  ;;  %v982_v20 = vld [vmem:[%s1514_s0 + $0x20] sm:$0xff]  ;;  %v991_v25 = vld [vmem:[%s1514_s0 + $0x68] sm:$0xff] }
   0x8   :  { %v997_v18 = vld [vmem:[%s1514_s0 + $0x98] sm:$0xff]  ;;  %v990_v21 = vld [vmem:[%s1514_s0 + $0x60] sm:$0xff]  ;;  %v999_v26 = vld [vmem:[%s1514_s0 + $0xa8] sm:$0xff] }
   0x9   :  { %v1005_v19 = vld [vmem:[%s1514_s0 + $0xd8] sm:$0xff]  ;;  %v998_v22 = vld [vmem:[%s1514_s0 + $0xa0] sm:$0xff]  ;;  %v1007_v27 = vld [vmem:[%s1514_s0 + $0xe8] sm:$0xff] }
   0xa   :  { %378 = vmatpush.bf16.msra.mxu0 %v1011_v2  ;;  %1020 = vmatpush.bf16.msra.mxu1 %v1011_v2  ;;  %v1006_v23 = vld [vmem:[%s1514_s0 + $0xe0] sm:$0xff]  ;;  %v984_v28 = vld [vmem:[%s1514_s0 + $0x30] sm:$0xff]  ;;  %v985_v32 = vld [vmem:[%s1514_s0 + $0x38] sm:$0xff] }
   0xb   :  { %1021 = vmatpush.bf16.msra.mxu2 %v1011_v2  ;;  %1022 = vmatpush.bf16.msra.mxu3 %v1011_v2  ;;  %v992_v29 = vld [vmem:[%s1514_s0 + $0x70] sm:$0xff]  ;;  %v993_v33 = vld [vmem:[%s1514_s0 + $0x78] sm:$0xff]  ;;  %v1190_v36 = vld [vmem:[%s1513_s2] ss:$0 sm:$0xff] }
   0xc   :  { %v1000_v30 = vld [vmem:[%s1514_s0 + $0xb0] sm:$0xff]  ;;  %v1001_v34 = vld [vmem:[%s1514_s0 + $0xb8] sm:$0xff] }
   0xd   :  { %v1008_v31 = vld [vmem:[%s1514_s0 + $0xf0] sm:$0xff]  ;;  %v1009_v35 = vld [vmem:[%s1514_s0 + $0xf8] sm:$0xff] }
   0xe   :  { %379 = vmatpush.bf16.msra.mxu0 %v1010_v3  ;;  %1023 = vmatpush.bf16.msra.mxu1 %v1010_v3 }
   0xf   :  { %1024 = vmatpush.bf16.msra.mxu2 %v1010_v3  ;;  %1025 = vmatpush.bf16.msra.mxu3 %v1010_v3 }
  0x11   :  { %946 = vmatmul.msk.bf16.vlgmr.msra.gmra.mxu0 %vm275_vm0, %v978_v4  ;;  %954 = vmatmul.msk.bf16.vlgmr.msra.gmra.mxu1 %vm275_vm0, %v986_v5 }
  0x12   :  { %962 = vmatmul.msk.bf16.vlgmr.msra.gmra.mxu2 %vm275_vm0, %v994_v6  ;;  %970 = vmatmul.msk.bf16.vlgmr.msra.gmra.mxu3 %vm275_vm0, %v1002_v7 }
  0x21   :  { %947 = vmatmul.msk.bf16.gmra.mxu0 %vm275_vm0, %v979_v8  ;;  %955 = vmatmul.msk.bf16.gmra.mxu1 %vm275_vm0, %v987_v9 }
  0x22   :  { %963 = vmatmul.msk.bf16.gmra.mxu2 %vm275_vm0, %v995_v10  ;;  %971 = vmatmul.msk.bf16.gmra.mxu3 %vm275_vm0, %v1003_v11 }
  0x31   :  { %948 = vmatmul.msk.bf16.gmra.mxu0 %vm275_vm0, %v980_v12  ;;  %956 = vmatmul.msk.bf16.gmra.mxu1 %vm275_vm0, %v988_v13 }
  0x32   :  { %964 = vmatmul.msk.bf16.gmra.mxu2 %vm275_vm0, %v996_v14  ;;  %972 = vmatmul.msk.bf16.gmra.mxu3 %vm275_vm0, %v1004_v15 }
  0x41   :  { %949 = vmatmul.msk.bf16.gmra.mxu0 %vm275_vm0, %v981_v16  ;;  %957 = vmatmul.msk.bf16.gmra.mxu1 %vm275_vm0, %v989_v17 }
  0x42   :  { %965 = vmatmul.msk.bf16.gmra.mxu2 %vm275_vm0, %v997_v18  ;;  %973 = vmatmul.msk.bf16.gmra.mxu3 %vm275_vm0, %v1005_v19 }
  0x51   :  { %950 = vmatmul.msk.bf16.gmra.mxu0 %vm275_vm0, %v982_v20  ;;  %958 = vmatmul.msk.bf16.gmra.mxu1 %vm275_vm0, %v990_v21 }
  0x52   :  { %966 = vmatmul.msk.bf16.gmra.mxu2 %vm275_vm0, %v998_v22  ;;  %974 = vmatmul.msk.bf16.gmra.mxu3 %vm275_vm0, %v1006_v23 }
  0x61   :  { %951 = vmatmul.msk.bf16.gmra.mxu0 %vm275_vm0, %v983_v24  ;;  %959 = vmatmul.msk.bf16.gmra.mxu1 %vm275_vm0, %v991_v25 }
  0x62   :  { %967 = vmatmul.msk.bf16.gmra.mxu2 %vm275_vm0, %v999_v26  ;;  %975 = vmatmul.msk.bf16.gmra.mxu3 %vm275_vm0, %v1007_v27 }
  0x71   :  { %952 = vmatmul.msk.bf16.gmra.mxu0 %vm275_vm0, %v984_v28  ;;  %960 = vmatmul.msk.bf16.gmra.mxu1 %vm275_vm0, %v992_v29 }
  0x72   :  { %968 = vmatmul.msk.bf16.gmra.mxu2 %vm275_vm0, %v1000_v30  ;;  %976 = vmatmul.msk.bf16.gmra.mxu3 %vm275_vm0, %v1008_v31 }
  0x81   :  { %953 = vmatmul.msk.bf16.gmra.mxu0 %vm275_vm0, %v985_v32  ;;  %961 = vmatmul.msk.bf16.gmra.mxu1 %vm275_vm0, %v993_v33 }
  0x82   :  { %969 = vmatmul.msk.bf16.gmra.mxu2 %vm275_vm0, %v1001_v34  ;;  %977 = vmatmul.msk.bf16.gmra.mxu3 %vm275_vm0, %v1009_v35 }
  0x8e   :  { %v381_v37 = vpop.f32.mrf.mxu0  ;;  %v421_v38 = vpop.f32.mrf.mxu1 }
  0x8f   :  { %v382_v39 = vadd.f32 %v1190_v36, %v381_v37  ;;  %v422_v40 = vadd.f32 %v1190_v36, %v421_v38 }
  0x91   :  { %v541_v41 = vmul.f32 0.2, %v382_v39  ;;  %v557_v42 = vmul.f32 0.2, %v422_v40 }
  0x93   :  { %v605_v43 = vmax.f32 %v382_v39, %v541_v41  ;;  %v621_v44 = vmax.f32 %v422_v40, %v557_v42 }
  0x95   :  { %v669_v45 = vpack.c.bf16 %v605_v43, %v605_v43  ;;  %v685_v46 = vpack.c.bf16 %v621_v44, %v621_v44  ;;  %v461_v47 = vpop.f32.mrf.mxu2  ;;  %v501_v48 = vpop.f32.mrf.mxu3 }
  0x96   :  { %v462_v49 = vadd.f32 %v1190_v36, %v461_v47  ;;  %v502_v50 = vadd.f32 %v1190_v36, %v501_v48  ;;  %v383_v51 = vpop.f32.mrf.mxu0  ;;  %v423_v52 = vpop.f32.mrf.mxu1 }
  0x97   :  { %734 = vst.msk [vmem:[%s1515_s3] sm:$0xf] %vm733_vm1, %v669_v45  ;;  %v384_v53 = vadd.f32 %v1190_v36, %v383_v51  ;;  %v424_v54 = vadd.f32 %v1190_v36, %v423_v52 }
  0x98   :  { %750 = vst.msk [vmem:[%s1515_s3 + $0x40] sm:$0xf] %vm733_vm1, %v685_v46  ;;  %v573_v55 = vmul.f32 0.2, %v462_v49  ;;  %v589_v56 = vmul.f32 0.2, %v502_v50 }
  0x99   :  { %v542_v57 = vmul.f32 0.2, %v384_v53  ;;  %v558_v58 = vmul.f32 0.2, %v424_v54 }
  0x9a   :  { %v637_v59 = vmax.f32 %v462_v49, %v573_v55  ;;  %v653_v60 = vmax.f32 %v502_v50, %v589_v56 }
  0x9b   :  { %v606_v61 = vmax.f32 %v384_v53, %v542_v57  ;;  %v622_v62 = vmax.f32 %v424_v54, %v558_v58 }
  0x9c   :  { %v701_v63 = vpack.c.bf16 %v637_v59, %v637_v59  ;;  %v717_v0 = vpack.c.bf16 %v653_v60, %v653_v60 }
  0x9d   :  { %v670_v1 = vpack.c.bf16 %v606_v61, %v606_v61  ;;  %v686_v2 = vpack.c.bf16 %v622_v62, %v622_v62  ;;  %v463_v3 = vpop.f32.mrf.mxu2  ;;  %v503_v4 = vpop.f32.mrf.mxu3 }
  0x9e   :  { %766 = vst.msk [vmem:[%s1515_s3 + $0x80] sm:$0xf] %vm733_vm1, %v701_v63  ;;  %v464_v5 = vadd.f32 %v1190_v36, %v463_v3  ;;  %v504_v6 = vadd.f32 %v1190_v36, %v503_v4  ;;  %v386_v7 = vpop.f32.mrf.mxu0  ;;  %v426_v8 = vpop.f32.mrf.mxu1 }
  0x9f   :  { %782 = vst.msk [vmem:[%s1515_s3 + $0xc0] sm:$0xf] %vm733_vm1, %v717_v0  ;;  %v387_v9 = vadd.f32 %v1190_v36, %v386_v7  ;;  %v427_v10 = vadd.f32 %v1190_v36, %v426_v8 }
  0xa0   :  { %735 = vst.msk [vmem:[%s1515_s3 + $0x4] sm:$0xf] %vm733_vm1, %v670_v1  ;;  %v574_v11 = vmul.f32 0.2, %v464_v5  ;;  %v590_v12 = vmul.f32 0.2, %v504_v6 }
  0xa1   :  { %751 = vst.msk [vmem:[%s1515_s3 + $0x44] sm:$0xf] %vm733_vm1, %v686_v2  ;;  %v543_v13 = vmul.f32 0.2, %v387_v9  ;;  %v559_v14 = vmul.f32 0.2, %v427_v10 }
  0xa2   :  { %v638_v15 = vmax.f32 %v464_v5, %v574_v11  ;;  %v654_v16 = vmax.f32 %v504_v6, %v590_v12 }
  0xa3   :  { %v607_v17 = vmax.f32 %v387_v9, %v543_v13  ;;  %v623_v18 = vmax.f32 %v427_v10, %v559_v14 }
  0xa4   :  { %v702_v19 = vpack.c.bf16 %v638_v15, %v638_v15  ;;  %v718_v20 = vpack.c.bf16 %v654_v16, %v654_v16 }
  0xa5   :  { %v671_v21 = vpack.c.bf16 %v607_v17, %v607_v17  ;;  %v687_v22 = vpack.c.bf16 %v623_v18, %v623_v18  ;;  %v466_v23 = vpop.f32.mrf.mxu2  ;;  %v506_v24 = vpop.f32.mrf.mxu3 }
  0xa6   :  { %767 = vst.msk [vmem:[%s1515_s3 + $0x84] sm:$0xf] %vm733_vm1, %v702_v19  ;;  %v467_v25 = vadd.f32 %v1190_v36, %v466_v23  ;;  %v507_v26 = vadd.f32 %v1190_v36, %v506_v24  ;;  %v388_v27 = vpop.f32.mrf.mxu0  ;;  %v428_v28 = vpop.f32.mrf.mxu1 }
  0xa7   :  { %783 = vst.msk [vmem:[%s1515_s3 + $0xc4] sm:$0xf] %vm733_vm1, %v718_v20  ;;  %v389_v29 = vadd.f32 %v1190_v36, %v388_v27  ;;  %v429_v30 = vadd.f32 %v1190_v36, %v428_v28 }
  0xa8   :  { %736 = vst.msk [vmem:[%s1515_s3 + $0x8] sm:$0xf] %vm733_vm1, %v671_v21  ;;  %v575_v31 = vmul.f32 0.2, %v467_v25  ;;  %v591_v32 = vmul.f32 0.2, %v507_v26 }
  0xa9   :  { %752 = vst.msk [vmem:[%s1515_s3 + $0x48] sm:$0xf] %vm733_vm1, %v687_v22  ;;  %v544_v33 = vmul.f32 0.2, %v389_v29  ;;  %v560_v34 = vmul.f32 0.2, %v429_v30 }
  0xaa   :  { %v639_v35 = vmax.f32 %v467_v25, %v575_v31  ;;  %v655_v37 = vmax.f32 %v507_v26, %v591_v32 }
  0xab   :  { %v608_v38 = vmax.f32 %v389_v29, %v544_v33  ;;  %v624_v39 = vmax.f32 %v429_v30, %v560_v34 }
  0xac   :  { %v703_v40 = vpack.c.bf16 %v639_v35, %v639_v35  ;;  %v719_v41 = vpack.c.bf16 %v655_v37, %v655_v37 }
  0xad   :  { %v672_v42 = vpack.c.bf16 %v608_v38, %v608_v38  ;;  %v688_v43 = vpack.c.bf16 %v624_v39, %v624_v39  ;;  %v468_v44 = vpop.f32.mrf.mxu2  ;;  %v508_v45 = vpop.f32.mrf.mxu3 }
  0xae   :  { %768 = vst.msk [vmem:[%s1515_s3 + $0x88] sm:$0xf] %vm733_vm1, %v703_v40  ;;  %v469_v46 = vadd.f32 %v1190_v36, %v468_v44  ;;  %v509_v47 = vadd.f32 %v1190_v36, %v508_v45  ;;  %v391_v48 = vpop.f32.mrf.mxu0  ;;  %v431_v49 = vpop.f32.mrf.mxu1 }
  0xaf   :  { %784 = vst.msk [vmem:[%s1515_s3 + $0xc8] sm:$0xf] %vm733_vm1, %v719_v41  ;;  %v392_v50 = vadd.f32 %v1190_v36, %v391_v48  ;;  %v432_v51 = vadd.f32 %v1190_v36, %v431_v49 }
  0xb0   :  { %737 = vst.msk [vmem:[%s1515_s3 + $0xc] sm:$0xf] %vm733_vm1, %v672_v42  ;;  %v576_v52 = vmul.f32 0.2, %v469_v46  ;;  %v592_v53 = vmul.f32 0.2, %v509_v47 }
  0xb1   :  { %753 = vst.msk [vmem:[%s1515_s3 + $0x4c] sm:$0xf] %vm733_vm1, %v688_v43  ;;  %v545_v54 = vmul.f32 0.2, %v392_v50  ;;  %v561_v55 = vmul.f32 0.2, %v432_v51 }
  0xb2   :  { %v640_v56 = vmax.f32 %v469_v46, %v576_v52  ;;  %v656_v57 = vmax.f32 %v509_v47, %v592_v53 }
  0xb3   :  { %v609_v58 = vmax.f32 %v392_v50, %v545_v54  ;;  %v625_v59 = vmax.f32 %v432_v51, %v561_v55 }
  0xb4   :  { %v704_v60 = vpack.c.bf16 %v640_v56, %v640_v56  ;;  %v720_v61 = vpack.c.bf16 %v656_v57, %v656_v57 }
  0xb5   :  { %v673_v62 = vpack.c.bf16 %v609_v58, %v609_v58  ;;  %v689_v63 = vpack.c.bf16 %v625_v59, %v625_v59  ;;  %v471_v0 = vpop.f32.mrf.mxu2  ;;  %v511_v1 = vpop.f32.mrf.mxu3 }
  0xb6   :  { %769 = vst.msk [vmem:[%s1515_s3 + $0x8c] sm:$0xf] %vm733_vm1, %v704_v60  ;;  %v472_v2 = vadd.f32 %v1190_v36, %v471_v0  ;;  %v512_v3 = vadd.f32 %v1190_v36, %v511_v1  ;;  %v393_v4 = vpop.f32.mrf.mxu0  ;;  %v433_v5 = vpop.f32.mrf.mxu1 }
  0xb7   :  { %785 = vst.msk [vmem:[%s1515_s3 + $0xcc] sm:$0xf] %vm733_vm1, %v720_v61  ;;  %v394_v6 = vadd.f32 %v1190_v36, %v393_v4  ;;  %v434_v7 = vadd.f32 %v1190_v36, %v433_v5 }
  0xb8   :  { %738 = vst.msk [vmem:[%s1515_s3 + $0x10] sm:$0xf] %vm733_vm1, %v673_v62  ;;  %v577_v8 = vmul.f32 0.2, %v472_v2  ;;  %v593_v9 = vmul.f32 0.2, %v512_v3 }
  0xb9   :  { %754 = vst.msk [vmem:[%s1515_s3 + $0x50] sm:$0xf] %vm733_vm1, %v689_v63  ;;  %v546_v10 = vmul.f32 0.2, %v394_v6  ;;  %v562_v11 = vmul.f32 0.2, %v434_v7 }
  0xba   :  { %v641_v12 = vmax.f32 %v472_v2, %v577_v8  ;;  %v657_v13 = vmax.f32 %v512_v3, %v593_v9 }
  0xbb   :  { %v610_v14 = vmax.f32 %v394_v6, %v546_v10  ;;  %v626_v15 = vmax.f32 %v434_v7, %v562_v11 }
  0xbc   :  { %v705_v16 = vpack.c.bf16 %v641_v12, %v641_v12  ;;  %v721_v17 = vpack.c.bf16 %v657_v13, %v657_v13 }
  0xbd   :  { %v674_v18 = vpack.c.bf16 %v610_v14, %v610_v14  ;;  %v690_v19 = vpack.c.bf16 %v626_v15, %v626_v15  ;;  %v473_v20 = vpop.f32.mrf.mxu2  ;;  %v513_v21 = vpop.f32.mrf.mxu3 }
  0xbe   :  { %770 = vst.msk [vmem:[%s1515_s3 + $0x90] sm:$0xf] %vm733_vm1, %v705_v16  ;;  %v474_v22 = vadd.f32 %v1190_v36, %v473_v20  ;;  %v514_v23 = vadd.f32 %v1190_v36, %v513_v21  ;;  %v396_v24 = vpop.f32.mrf.mxu0  ;;  %v436_v25 = vpop.f32.mrf.mxu1 }
  0xbf   :  { %786 = vst.msk [vmem:[%s1515_s3 + $0xd0] sm:$0xf] %vm733_vm1, %v721_v17  ;;  %v397_v26 = vadd.f32 %v1190_v36, %v396_v24  ;;  %v437_v27 = vadd.f32 %v1190_v36, %v436_v25 }
  0xc0   :  { %739 = vst.msk [vmem:[%s1515_s3 + $0x14] sm:$0xf] %vm733_vm1, %v674_v18  ;;  %v578_v28 = vmul.f32 0.2, %v474_v22  ;;  %v594_v29 = vmul.f32 0.2, %v514_v23 }
  0xc1   :  { %755 = vst.msk [vmem:[%s1515_s3 + $0x54] sm:$0xf] %vm733_vm1, %v690_v19  ;;  %v547_v30 = vmul.f32 0.2, %v397_v26  ;;  %v563_v31 = vmul.f32 0.2, %v437_v27 }
  0xc2   :  { %v642_v32 = vmax.f32 %v474_v22, %v578_v28  ;;  %v658_v33 = vmax.f32 %v514_v23, %v594_v29 }
  0xc3   :  { %v611_v34 = vmax.f32 %v397_v26, %v547_v30  ;;  %v627_v35 = vmax.f32 %v437_v27, %v563_v31 }
  0xc4   :  { %v706_v37 = vpack.c.bf16 %v642_v32, %v642_v32  ;;  %v722_v38 = vpack.c.bf16 %v658_v33, %v658_v33 }
  0xc5   :  { %v675_v39 = vpack.c.bf16 %v611_v34, %v611_v34  ;;  %v691_v40 = vpack.c.bf16 %v627_v35, %v627_v35  ;;  %v476_v41 = vpop.f32.mrf.mxu2  ;;  %v516_v42 = vpop.f32.mrf.mxu3 }
  0xc6   :  { %771 = vst.msk [vmem:[%s1515_s3 + $0x94] sm:$0xf] %vm733_vm1, %v706_v37  ;;  %v477_v43 = vadd.f32 %v1190_v36, %v476_v41  ;;  %v517_v44 = vadd.f32 %v1190_v36, %v516_v42  ;;  %v398_v45 = vpop.f32.mrf.mxu0  ;;  %v438_v46 = vpop.f32.mrf.mxu1 }
  0xc7   :  { %787 = vst.msk [vmem:[%s1515_s3 + $0xd4] sm:$0xf] %vm733_vm1, %v722_v38  ;;  %v399_v47 = vadd.f32 %v1190_v36, %v398_v45  ;;  %v439_v48 = vadd.f32 %v1190_v36, %v438_v46 }
  0xc8   :  { %740 = vst.msk [vmem:[%s1515_s3 + $0x18] sm:$0xf] %vm733_vm1, %v675_v39  ;;  %v579_v49 = vmul.f32 0.2, %v477_v43  ;;  %v595_v50 = vmul.f32 0.2, %v517_v44 }
  0xc9   :  { %756 = vst.msk [vmem:[%s1515_s3 + $0x58] sm:$0xf] %vm733_vm1, %v691_v40  ;;  %v548_v51 = vmul.f32 0.2, %v399_v47  ;;  %v564_v52 = vmul.f32 0.2, %v439_v48 }
  0xca   :  { %v643_v53 = vmax.f32 %v477_v43, %v579_v49  ;;  %v659_v54 = vmax.f32 %v517_v44, %v595_v50 }
  0xcb   :  { %v612_v55 = vmax.f32 %v399_v47, %v548_v51  ;;  %v628_v56 = vmax.f32 %v439_v48, %v564_v52 }
  0xcc   :  { %v707_v57 = vpack.c.bf16 %v643_v53, %v643_v53  ;;  %v723_v58 = vpack.c.bf16 %v659_v54, %v659_v54 }
  0xcd   :  { %v676_v59 = vpack.c.bf16 %v612_v55, %v612_v55  ;;  %v692_v60 = vpack.c.bf16 %v628_v56, %v628_v56  ;;  %v478_v61 = vpop.f32.mrf.mxu2  ;;  %v518_v62 = vpop.f32.mrf.mxu3 }
  0xce   :  { %772 = vst.msk [vmem:[%s1515_s3 + $0x98] sm:$0xf] %vm733_vm1, %v707_v57  ;;  %v479_v63 = vadd.f32 %v1190_v36, %v478_v61  ;;  %v519_v0 = vadd.f32 %v1190_v36, %v518_v62  ;;  %v401_v1 = vpop.f32.mrf.mxu0  ;;  %v441_v2 = vpop.f32.mrf.mxu1 }
  0xcf   :  { %788 = vst.msk [vmem:[%s1515_s3 + $0xd8] sm:$0xf] %vm733_vm1, %v723_v58  ;;  %v402_v3 = vadd.f32 %v1190_v36, %v401_v1  ;;  %v442_v4 = vadd.f32 %v1190_v36, %v441_v2 }
  0xd0   :  { %741 = vst.msk [vmem:[%s1515_s3 + $0x1c] sm:$0xf] %vm733_vm1, %v676_v59  ;;  %v580_v5 = vmul.f32 0.2, %v479_v63  ;;  %v596_v6 = vmul.f32 0.2, %v519_v0 }
  0xd1   :  { %757 = vst.msk [vmem:[%s1515_s3 + $0x5c] sm:$0xf] %vm733_vm1, %v692_v60  ;;  %v549_v7 = vmul.f32 0.2, %v402_v3  ;;  %v565_v8 = vmul.f32 0.2, %v442_v4 }
  0xd2   :  { %v644_v9 = vmax.f32 %v479_v63, %v580_v5  ;;  %v660_v10 = vmax.f32 %v519_v0, %v596_v6 }
  0xd3   :  { %v613_v11 = vmax.f32 %v402_v3, %v549_v7  ;;  %v629_v12 = vmax.f32 %v442_v4, %v565_v8 }
  0xd4   :  { %v708_v13 = vpack.c.bf16 %v644_v9, %v644_v9  ;;  %v724_v14 = vpack.c.bf16 %v660_v10, %v660_v10 }
  0xd5   :  { %v677_v15 = vpack.c.bf16 %v613_v11, %v613_v11  ;;  %v693_v16 = vpack.c.bf16 %v629_v12, %v629_v12  ;;  %v481_v17 = vpop.f32.mrf.mxu2  ;;  %v521_v18 = vpop.f32.mrf.mxu3 }
  0xd6   :  { %773 = vst.msk [vmem:[%s1515_s3 + $0x9c] sm:$0xf] %vm733_vm1, %v708_v13  ;;  %v482_v19 = vadd.f32 %v1190_v36, %v481_v17  ;;  %v522_v20 = vadd.f32 %v1190_v36, %v521_v18  ;;  %v403_v21 = vpop.f32.mrf.mxu0  ;;  %v443_v22 = vpop.f32.mrf.mxu1 }
  0xd7   :  { %789 = vst.msk [vmem:[%s1515_s3 + $0xdc] sm:$0xf] %vm733_vm1, %v724_v14  ;;  %v404_v23 = vadd.f32 %v1190_v36, %v403_v21  ;;  %v444_v24 = vadd.f32 %v1190_v36, %v443_v22 }
  0xd8   :  { %742 = vst.msk [vmem:[%s1515_s3 + $0x20] sm:$0xf] %vm733_vm1, %v677_v15  ;;  %v581_v25 = vmul.f32 0.2, %v482_v19  ;;  %v597_v26 = vmul.f32 0.2, %v522_v20 }
  0xd9   :  { %758 = vst.msk [vmem:[%s1515_s3 + $0x60] sm:$0xf] %vm733_vm1, %v693_v16  ;;  %v550_v27 = vmul.f32 0.2, %v404_v23  ;;  %v566_v28 = vmul.f32 0.2, %v444_v24 }
  0xda   :  { %v645_v29 = vmax.f32 %v482_v19, %v581_v25  ;;  %v661_v30 = vmax.f32 %v522_v20, %v597_v26 }
  0xdb   :  { %v614_v31 = vmax.f32 %v404_v23, %v550_v27  ;;  %v630_v32 = vmax.f32 %v444_v24, %v566_v28 }
  0xdc   :  { %v709_v33 = vpack.c.bf16 %v645_v29, %v645_v29  ;;  %v725_v34 = vpack.c.bf16 %v661_v30, %v661_v30 }
  0xdd   :  { %v678_v35 = vpack.c.bf16 %v614_v31, %v614_v31  ;;  %v694_v37 = vpack.c.bf16 %v630_v32, %v630_v32  ;;  %v483_v38 = vpop.f32.mrf.mxu2  ;;  %v523_v39 = vpop.f32.mrf.mxu3 }
  0xde   :  { %774 = vst.msk [vmem:[%s1515_s3 + $0xa0] sm:$0xf] %vm733_vm1, %v709_v33  ;;  %v484_v40 = vadd.f32 %v1190_v36, %v483_v38  ;;  %v524_v41 = vadd.f32 %v1190_v36, %v523_v39  ;;  %v406_v42 = vpop.f32.mrf.mxu0  ;;  %v446_v43 = vpop.f32.mrf.mxu1 }
  0xdf   :  { %790 = vst.msk [vmem:[%s1515_s3 + $0xe0] sm:$0xf] %vm733_vm1, %v725_v34  ;;  %v407_v44 = vadd.f32 %v1190_v36, %v406_v42  ;;  %v447_v45 = vadd.f32 %v1190_v36, %v446_v43 }
  0xe0   :  { %743 = vst.msk [vmem:[%s1515_s3 + $0x24] sm:$0xf] %vm733_vm1, %v678_v35  ;;  %v582_v46 = vmul.f32 0.2, %v484_v40  ;;  %v598_v47 = vmul.f32 0.2, %v524_v41 }
  0xe1   :  { %759 = vst.msk [vmem:[%s1515_s3 + $0x64] sm:$0xf] %vm733_vm1, %v694_v37  ;;  %v551_v48 = vmul.f32 0.2, %v407_v44  ;;  %v567_v49 = vmul.f32 0.2, %v447_v45 }
  0xe2   :  { %v646_v50 = vmax.f32 %v484_v40, %v582_v46  ;;  %v662_v51 = vmax.f32 %v524_v41, %v598_v47 }
  0xe3   :  { %v615_v52 = vmax.f32 %v407_v44, %v551_v48  ;;  %v631_v53 = vmax.f32 %v447_v45, %v567_v49 }
  0xe4   :  { %v710_v54 = vpack.c.bf16 %v646_v50, %v646_v50  ;;  %v726_v55 = vpack.c.bf16 %v662_v51, %v662_v51 }
  0xe5   :  { %v679_v56 = vpack.c.bf16 %v615_v52, %v615_v52  ;;  %v695_v57 = vpack.c.bf16 %v631_v53, %v631_v53  ;;  %v486_v58 = vpop.f32.mrf.mxu2  ;;  %v526_v59 = vpop.f32.mrf.mxu3 }
  0xe6   :  { %775 = vst.msk [vmem:[%s1515_s3 + $0xa4] sm:$0xf] %vm733_vm1, %v710_v54  ;;  %v487_v60 = vadd.f32 %v1190_v36, %v486_v58  ;;  %v527_v61 = vadd.f32 %v1190_v36, %v526_v59  ;;  %v408_v62 = vpop.f32.mrf.mxu0  ;;  %v448_v63 = vpop.f32.mrf.mxu1 }
  0xe7   :  { %791 = vst.msk [vmem:[%s1515_s3 + $0xe4] sm:$0xf] %vm733_vm1, %v726_v55  ;;  %v409_v0 = vadd.f32 %v1190_v36, %v408_v62  ;;  %v449_v1 = vadd.f32 %v1190_v36, %v448_v63 }
  0xe8   :  { %744 = vst.msk [vmem:[%s1515_s3 + $0x28] sm:$0xf] %vm733_vm1, %v679_v56  ;;  %v583_v2 = vmul.f32 0.2, %v487_v60  ;;  %v599_v3 = vmul.f32 0.2, %v527_v61 }
  0xe9   :  { %760 = vst.msk [vmem:[%s1515_s3 + $0x68] sm:$0xf] %vm733_vm1, %v695_v57  ;;  %v552_v4 = vmul.f32 0.2, %v409_v0  ;;  %v568_v5 = vmul.f32 0.2, %v449_v1 }
  0xea   :  { %v647_v6 = vmax.f32 %v487_v60, %v583_v2  ;;  %v663_v7 = vmax.f32 %v527_v61, %v599_v3 }
  0xeb   :  { %v616_v8 = vmax.f32 %v409_v0, %v552_v4  ;;  %v632_v9 = vmax.f32 %v449_v1, %v568_v5 }
  0xec   :  { %v711_v10 = vpack.c.bf16 %v647_v6, %v647_v6  ;;  %v727_v11 = vpack.c.bf16 %v663_v7, %v663_v7 }
  0xed   :  { %v680_v12 = vpack.c.bf16 %v616_v8, %v616_v8  ;;  %v696_v13 = vpack.c.bf16 %v632_v9, %v632_v9  ;;  %v488_v14 = vpop.f32.mrf.mxu2  ;;  %v528_v15 = vpop.f32.mrf.mxu3 }
  0xee   :  { %776 = vst.msk [vmem:[%s1515_s3 + $0xa8] sm:$0xf] %vm733_vm1, %v711_v10  ;;  %v489_v16 = vadd.f32 %v1190_v36, %v488_v14  ;;  %v529_v17 = vadd.f32 %v1190_v36, %v528_v15  ;;  %v411_v18 = vpop.f32.mrf.mxu0  ;;  %v451_v19 = vpop.f32.mrf.mxu1 }
  0xef   :  { %792 = vst.msk [vmem:[%s1515_s3 + $0xe8] sm:$0xf] %vm733_vm1, %v727_v11  ;;  %v412_v20 = vadd.f32 %v1190_v36, %v411_v18  ;;  %v452_v21 = vadd.f32 %v1190_v36, %v451_v19 }
  0xf0   :  { %745 = vst.msk [vmem:[%s1515_s3 + $0x2c] sm:$0xf] %vm733_vm1, %v680_v12  ;;  %v584_v22 = vmul.f32 0.2, %v489_v16  ;;  %v600_v23 = vmul.f32 0.2, %v529_v17 }
  0xf1   :  { %761 = vst.msk [vmem:[%s1515_s3 + $0x6c] sm:$0xf] %vm733_vm1, %v696_v13  ;;  %v553_v24 = vmul.f32 0.2, %v412_v20  ;;  %v569_v25 = vmul.f32 0.2, %v452_v21 }
  0xf2   :  { %v648_v26 = vmax.f32 %v489_v16, %v584_v22  ;;  %v664_v27 = vmax.f32 %v529_v17, %v600_v23 }
  0xf3   :  { %v617_v28 = vmax.f32 %v412_v20, %v553_v24  ;;  %v633_v29 = vmax.f32 %v452_v21, %v569_v25 }
  0xf4   :  { %v712_v30 = vpack.c.bf16 %v648_v26, %v648_v26  ;;  %v728_v31 = vpack.c.bf16 %v664_v27, %v664_v27 }
  0xf5   :  { %v681_v32 = vpack.c.bf16 %v617_v28, %v617_v28  ;;  %v697_v33 = vpack.c.bf16 %v633_v29, %v633_v29  ;;  %v491_v34 = vpop.f32.mrf.mxu2  ;;  %v531_v35 = vpop.f32.mrf.mxu3 }
  0xf6   :  { %777 = vst.msk [vmem:[%s1515_s3 + $0xac] sm:$0xf] %vm733_vm1, %v712_v30  ;;  %v492_v37 = vadd.f32 %v1190_v36, %v491_v34  ;;  %v532_v38 = vadd.f32 %v1190_v36, %v531_v35  ;;  %v413_v39 = vpop.f32.mrf.mxu0  ;;  %v453_v40 = vpop.f32.mrf.mxu1 }
  0xf7   :  { %793 = vst.msk [vmem:[%s1515_s3 + $0xec] sm:$0xf] %vm733_vm1, %v728_v31  ;;  %v414_v41 = vadd.f32 %v1190_v36, %v413_v39  ;;  %v454_v42 = vadd.f32 %v1190_v36, %v453_v40 }
  0xf8   :  { %746 = vst.msk [vmem:[%s1515_s3 + $0x30] sm:$0xf] %vm733_vm1, %v681_v32  ;;  %v585_v43 = vmul.f32 0.2, %v492_v37  ;;  %v601_v44 = vmul.f32 0.2, %v532_v38 }
  0xf9   :  { %762 = vst.msk [vmem:[%s1515_s3 + $0x70] sm:$0xf] %vm733_vm1, %v697_v33  ;;  %v554_v45 = vmul.f32 0.2, %v414_v41  ;;  %v570_v46 = vmul.f32 0.2, %v454_v42 }
  0xfa   :  { %v649_v47 = vmax.f32 %v492_v37, %v585_v43  ;;  %v665_v48 = vmax.f32 %v532_v38, %v601_v44 }
  0xfb   :  { %v618_v49 = vmax.f32 %v414_v41, %v554_v45  ;;  %v634_v50 = vmax.f32 %v454_v42, %v570_v46 }
  0xfc   :  { %v713_v51 = vpack.c.bf16 %v649_v47, %v649_v47  ;;  %v729_v52 = vpack.c.bf16 %v665_v48, %v665_v48 }
  0xfd   :  { %v682_v53 = vpack.c.bf16 %v618_v49, %v618_v49  ;;  %v698_v54 = vpack.c.bf16 %v634_v50, %v634_v50  ;;  %v493_v55 = vpop.f32.mrf.mxu2  ;;  %v533_v56 = vpop.f32.mrf.mxu3 }
  0xfe   :  { %778 = vst.msk [vmem:[%s1515_s3 + $0xb0] sm:$0xf] %vm733_vm1, %v713_v51  ;;  %v494_v57 = vadd.f32 %v1190_v36, %v493_v55  ;;  %v534_v58 = vadd.f32 %v1190_v36, %v533_v56  ;;  %v416_v59 = vpop.f32.mrf.mxu0  ;;  %v456_v60 = vpop.f32.mrf.mxu1 }
  0xff   :  { %794 = vst.msk [vmem:[%s1515_s3 + $0xf0] sm:$0xf] %vm733_vm1, %v729_v52  ;;  %v417_v61 = vadd.f32 %v1190_v36, %v416_v59  ;;  %v457_v62 = vadd.f32 %v1190_v36, %v456_v60 }
 0x100   :  { %747 = vst.msk [vmem:[%s1515_s3 + $0x34] sm:$0xf] %vm733_vm1, %v682_v53  ;;  %v586_v63 = vmul.f32 0.2, %v494_v57  ;;  %v602_v0 = vmul.f32 0.2, %v534_v58 }
 0x101   :  { %763 = vst.msk [vmem:[%s1515_s3 + $0x74] sm:$0xf] %vm733_vm1, %v698_v54  ;;  %v555_v1 = vmul.f32 0.2, %v417_v61  ;;  %v571_v2 = vmul.f32 0.2, %v457_v62 }
 0x102   :  { %v650_v3 = vmax.f32 %v494_v57, %v586_v63  ;;  %v666_v4 = vmax.f32 %v534_v58, %v602_v0 }
 0x103   :  { %v619_v5 = vmax.f32 %v417_v61, %v555_v1  ;;  %v635_v6 = vmax.f32 %v457_v62, %v571_v2 }
 0x104   :  { %v714_v7 = vpack.c.bf16 %v650_v3, %v650_v3  ;;  %v730_v8 = vpack.c.bf16 %v666_v4, %v666_v4 }
 0x105   :  { %v683_v9 = vpack.c.bf16 %v619_v5, %v619_v5  ;;  %v699_v10 = vpack.c.bf16 %v635_v6, %v635_v6  ;;  %v496_v11 = vpop.f32.mrf.mxu2  ;;  %v536_v12 = vpop.f32.mrf.mxu3 }
 0x106   :  { %779 = vst.msk [vmem:[%s1515_s3 + $0xb4] sm:$0xf] %vm733_vm1, %v714_v7  ;;  %v497_v13 = vadd.f32 %v1190_v36, %v496_v11  ;;  %v537_v14 = vadd.f32 %v1190_v36, %v536_v12  ;;  %v418_v15 = vpop.f32.mrf.mxu0  ;;  %v458_v16 = vpop.f32.mrf.mxu1 }
 0x107   :  { %795 = vst.msk [vmem:[%s1515_s3 + $0xf4] sm:$0xf] %vm733_vm1, %v730_v8  ;;  %v419_v17 = vadd.f32 %v1190_v36, %v418_v15  ;;  %v459_v18 = vadd.f32 %v1190_v36, %v458_v16 }
 0x108   :  { %748 = vst.msk [vmem:[%s1515_s3 + $0x38] sm:$0xf] %vm733_vm1, %v683_v9  ;;  %v587_v19 = vmul.f32 0.2, %v497_v13  ;;  %v603_v20 = vmul.f32 0.2, %v537_v14 }
 0x109   :  { %764 = vst.msk [vmem:[%s1515_s3 + $0x78] sm:$0xf] %vm733_vm1, %v699_v10  ;;  %v556_v21 = vmul.f32 0.2, %v419_v17  ;;  %v572_v22 = vmul.f32 0.2, %v459_v18 }
 0x10a   :  { %v651_v23 = vmax.f32 %v497_v13, %v587_v19  ;;  %v667_v24 = vmax.f32 %v537_v14, %v603_v20 }
 0x10b   :  { %v620_v25 = vmax.f32 %v419_v17, %v556_v21  ;;  %v636_v26 = vmax.f32 %v459_v18, %v572_v22 }
 0x10c   :  { %v715_v27 = vpack.c.bf16 %v651_v23, %v651_v23  ;;  %v731_v28 = vpack.c.bf16 %v667_v24, %v667_v24 }
 0x10d   :  { %v684_v29 = vpack.c.bf16 %v620_v25, %v620_v25  ;;  %v700_v30 = vpack.c.bf16 %v636_v26, %v636_v26  ;;  %v498_v31 = vpop.f32.mrf.mxu2  ;;  %v538_v32 = vpop.f32.mrf.mxu3 }
 0x10e   :  { %780 = vst.msk [vmem:[%s1515_s3 + $0xb8] sm:$0xf] %vm733_vm1, %v715_v27  ;;  %v499_v33 = vadd.f32 %v1190_v36, %v498_v31  ;;  %v539_v34 = vadd.f32 %v1190_v36, %v538_v32 }
 0x10f   :  { %796 = vst.msk [vmem:[%s1515_s3 + $0xf8] sm:$0xf] %vm733_vm1, %v731_v28 }
 0x110   :  { %749 = vst.msk [vmem:[%s1515_s3 + $0x3c] sm:$0xf] %vm733_vm1, %v684_v29  ;;  %v588_v35 = vmul.f32 0.2, %v499_v33  ;;  %v604_v37 = vmul.f32 0.2, %v539_v34 }
 0x111   :  { %765 = vst.msk [vmem:[%s1515_s3 + $0x7c] sm:$0xf] %vm733_vm1, %v700_v30 }
 0x112   :  { %v652_v38 = vmax.f32 %v499_v33, %v588_v35  ;;  %v668_v39 = vmax.f32 %v539_v34, %v604_v37 }
 0x114   :  { %v716_v36 = vpack.c.bf16 %v652_v38, %v652_v38  ;;  %v732_v40 = vpack.c.bf16 %v668_v39, %v668_v39 }
 0x116   :  { %781 = vst.msk [vmem:[%s1515_s3 + $0xbc] sm:$0xf] %vm733_vm1, %v716_v36 }
 0x117   :  { %797 = vst.msk [vmem:[%s1515_s3 + $0xfc] sm:$0xf] %vm733_vm1, %v732_v40 }

// kernel: netD_forward.6
= control target key start
LH: loop header
LB: loop body
LE: loop exit
PB: predicated region body
PF: predicated region fallthrough
CT: control target
= control target key end

     0   :  { %vm243_vm0 = vcmask 125952   ;;  %s522_s1 = inlined_call_operand.vmem [shape: bf16[128,16], index: 1, kind: input, shape index: {}]   ;;  %s523_s2 = inlined_call_operand.vmem [shape: f32[1,16], index: 2, kind: input, shape index: {}]   ;;  %s524_s0 = inlined_call_operand.vmem [shape: bf16[128,128], index: 0, kind: input, shape index: {}]   ;;  %s525_s3 = inlined_call_operand.vmem [shape: bf16[128,16], index: 3, kind: output, shape index: {}]  }
   0x1   :  { %v343_v0 = vld [vmem:[%s522_s1 + $0x38] sm:$0xff]  ;;  %v342_v1 = vld [vmem:[%s522_s1 + $0x30] sm:$0xff]  ;;  %v341_v2 = vld [vmem:[%s522_s1 + $0x28] sm:$0xff] }
   0x2   :  { %146 = vmatpush.bf16.msra.mxu0 %v343_v0  ;;  %344 = vmatpush.bf16.msra.mxu1 %v343_v0  ;;  %v340_v3 = vld [vmem:[%s522_s1 + $0x20] sm:$0xff]  ;;  %v339_v4 = vld [vmem:[%s522_s1 + $0x18] sm:$0xff]  ;;  %v338_v5 = vld [vmem:[%s522_s1 + $0x10] sm:$0xff] }
   0x3   :  { %345 = vmatpush.bf16.msra.mxu2 %v343_v0  ;;  %346 = vmatpush.bf16.msra.mxu3 %v343_v0  ;;  %v337_v6 = vld [vmem:[%s522_s1 + $0x8] sm:$0xff]  ;;  %v336_v7 = vld [vmem:[%s522_s1] sm:$0xff]  ;;  %v330_v9 = vld [vmem:[%s524_s0 + $0x10] sm:$0xff] }
   0x4   :  { %v328_v8 = vld [vmem:[%s524_s0] sm:$0xff]  ;;  %v334_v11 = vld [vmem:[%s524_s0 + $0x30] sm:$0xff]  ;;  %v329_v12 = vld [vmem:[%s524_s0 + $0x8] sm:$0xff] }
   0x5   :  { %v332_v10 = vld [vmem:[%s524_s0 + $0x20] sm:$0xff]  ;;  %v331_v13 = vld [vmem:[%s524_s0 + $0x18] sm:$0xff]  ;;  %v333_v14 = vld [vmem:[%s524_s0 + $0x28] sm:$0xff] }
   0x6   :  { %147 = vmatpush.bf16.msra.mxu0 %v342_v1  ;;  %347 = vmatpush.bf16.msra.mxu1 %v342_v1  ;;  %v335_v15 = vld [vmem:[%s524_s0 + $0x38] sm:$0xff]  ;;  %v440_v16 = vld [vmem:[%s523_s2] ss:$0 sm:$0xff] }
   0x7   :  { %348 = vmatpush.bf16.msra.mxu2 %v342_v1  ;;  %349 = vmatpush.bf16.msra.mxu3 %v342_v1 }
   0xa   :  { %148 = vmatpush.bf16.msra.mxu0 %v341_v2  ;;  %350 = vmatpush.bf16.msra.mxu1 %v341_v2 }
   0xb   :  { %351 = vmatpush.bf16.msra.mxu2 %v341_v2  ;;  %352 = vmatpush.bf16.msra.mxu3 %v341_v2 }
   0xe   :  { %149 = vmatpush.bf16.msra.mxu0 %v340_v3  ;;  %353 = vmatpush.bf16.msra.mxu1 %v340_v3 }
   0xf   :  { %354 = vmatpush.bf16.msra.mxu2 %v340_v3  ;;  %355 = vmatpush.bf16.msra.mxu3 %v340_v3 }
  0x12   :  { %150 = vmatpush.bf16.msra.mxu0 %v339_v4  ;;  %356 = vmatpush.bf16.msra.mxu1 %v339_v4 }
  0x13   :  { %357 = vmatpush.bf16.msra.mxu2 %v339_v4  ;;  %358 = vmatpush.bf16.msra.mxu3 %v339_v4 }
  0x16   :  { %151 = vmatpush.bf16.msra.mxu0 %v338_v5  ;;  %359 = vmatpush.bf16.msra.mxu1 %v338_v5 }
  0x17   :  { %360 = vmatpush.bf16.msra.mxu2 %v338_v5  ;;  %361 = vmatpush.bf16.msra.mxu3 %v338_v5 }
  0x1a   :  { %152 = vmatpush.bf16.msra.mxu0 %v337_v6  ;;  %362 = vmatpush.bf16.msra.mxu1 %v337_v6 }
  0x1b   :  { %363 = vmatpush.bf16.msra.mxu2 %v337_v6  ;;  %364 = vmatpush.bf16.msra.mxu3 %v337_v6 }
  0x1e   :  { %153 = vmatpush.bf16.msra.mxu0 %v336_v7  ;;  %365 = vmatpush.bf16.msra.mxu1 %v336_v7 }
  0x1f   :  { %366 = vmatpush.bf16.msra.mxu2 %v336_v7  ;;  %367 = vmatpush.bf16.msra.mxu3 %v336_v7 }
  0x21   :  { %154 = vmatmul.bf16.vlgmr.msra.gmra.mxu0 %v328_v8  ;;  %164 = vmatmul.bf16.vlgmr.msra.gmra.mxu1 %v330_v9 }
  0x22   :  { %174 = vmatmul.bf16.vlgmr.msra.gmra.mxu2 %v332_v10  ;;  %184 = vmatmul.bf16.vlgmr.msra.gmra.mxu3 %v334_v11 }
  0x31   :  { %159 = vmatmul.bf16.gmra.mxu0 %v329_v12  ;;  %169 = vmatmul.bf16.gmra.mxu1 %v331_v13 }
  0x32   :  { %179 = vmatmul.bf16.gmra.mxu2 %v333_v14  ;;  %189 = vmatmul.bf16.gmra.mxu3 %v335_v15 }
  0x9e   :  { %v155_v17 = vpop.f32.mrf.mxu0  ;;  %v165_v18 = vpop.f32.mrf.mxu1 }
  0x9f   :  { %v156_v19 = vadd.f32 %v440_v16, %v155_v17  ;;  %v166_v20 = vadd.f32 %v440_v16, %v165_v18 }
  0xa1   :  { %v195_v21 = vmul.f32 0.2, %v156_v19  ;;  %v199_v22 = vmul.f32 0.2, %v166_v20 }
  0xa3   :  { %v211_v23 = vmax.f32 %v156_v19, %v195_v21  ;;  %v215_v24 = vmax.f32 %v166_v20, %v199_v22 }
  0xa5   :  { %v227_v25 = vpack.c.bf16 %v211_v23, %v211_v23  ;;  %v231_v26 = vpack.c.bf16 %v215_v24, %v215_v24  ;;  %v175_v27 = vpop.f32.mrf.mxu2  ;;  %v185_v28 = vpop.f32.mrf.mxu3 }
  0xa6   :  { %v176_v29 = vadd.f32 %v440_v16, %v175_v27  ;;  %v186_v30 = vadd.f32 %v440_v16, %v185_v28  ;;  %v157_v31 = vpop.f32.mrf.mxu0  ;;  %v167_v32 = vpop.f32.mrf.mxu1 }
  0xa7   :  { %244 = vst.msk [vmem:[%s525_s3] sm:$0xf] %vm243_vm0, %v227_v25  ;;  %v158_v33 = vadd.f32 %v440_v16, %v157_v31  ;;  %v168_v34 = vadd.f32 %v440_v16, %v167_v32 }
  0xa8   :  { %248 = vst.msk [vmem:[%s525_s3 + $0x10] sm:$0xf] %vm243_vm0, %v231_v26  ;;  %v203_v35 = vmul.f32 0.2, %v176_v29  ;;  %v207_v36 = vmul.f32 0.2, %v186_v30 }
  0xa9   :  { %v196_v37 = vmul.f32 0.2, %v158_v33  ;;  %v200_v38 = vmul.f32 0.2, %v168_v34 }
  0xaa   :  { %v219_v39 = vmax.f32 %v176_v29, %v203_v35  ;;  %v223_v40 = vmax.f32 %v186_v30, %v207_v36 }
  0xab   :  { %v212_v41 = vmax.f32 %v158_v33, %v196_v37  ;;  %v216_v42 = vmax.f32 %v168_v34, %v200_v38 }
  0xac   :  { %v235_v43 = vpack.c.bf16 %v219_v39, %v219_v39  ;;  %v239_v44 = vpack.c.bf16 %v223_v40, %v223_v40 }
  0xad   :  { %v228_v45 = vpack.c.bf16 %v212_v41, %v212_v41  ;;  %v232_v46 = vpack.c.bf16 %v216_v42, %v216_v42  ;;  %v177_v47 = vpop.f32.mrf.mxu2  ;;  %v187_v48 = vpop.f32.mrf.mxu3 }
  0xae   :  { %252 = vst.msk [vmem:[%s525_s3 + $0x20] sm:$0xf] %vm243_vm0, %v235_v43  ;;  %v178_v49 = vadd.f32 %v440_v16, %v177_v47  ;;  %v188_v50 = vadd.f32 %v440_v16, %v187_v48  ;;  %v160_v51 = vpop.f32.mrf.mxu0  ;;  %v170_v52 = vpop.f32.mrf.mxu1 }
  0xaf   :  { %256 = vst.msk [vmem:[%s525_s3 + $0x30] sm:$0xf] %vm243_vm0, %v239_v44  ;;  %v161_v53 = vadd.f32 %v440_v16, %v160_v51  ;;  %v171_v54 = vadd.f32 %v440_v16, %v170_v52 }
  0xb0   :  { %245 = vst.msk [vmem:[%s525_s3 + $0x4] sm:$0xf] %vm243_vm0, %v228_v45  ;;  %v204_v55 = vmul.f32 0.2, %v178_v49  ;;  %v208_v56 = vmul.f32 0.2, %v188_v50 }
  0xb1   :  { %249 = vst.msk [vmem:[%s525_s3 + $0x14] sm:$0xf] %vm243_vm0, %v232_v46  ;;  %v197_v57 = vmul.f32 0.2, %v161_v53  ;;  %v201_v58 = vmul.f32 0.2, %v171_v54 }
  0xb2   :  { %v220_v59 = vmax.f32 %v178_v49, %v204_v55  ;;  %v224_v60 = vmax.f32 %v188_v50, %v208_v56 }
  0xb3   :  { %v213_v61 = vmax.f32 %v161_v53, %v197_v57  ;;  %v217_v62 = vmax.f32 %v171_v54, %v201_v58 }
  0xb4   :  { %v236_v63 = vpack.c.bf16 %v220_v59, %v220_v59  ;;  %v240_v0 = vpack.c.bf16 %v224_v60, %v224_v60 }
  0xb5   :  { %v229_v1 = vpack.c.bf16 %v213_v61, %v213_v61  ;;  %v233_v2 = vpack.c.bf16 %v217_v62, %v217_v62  ;;  %v180_v3 = vpop.f32.mrf.mxu2  ;;  %v190_v4 = vpop.f32.mrf.mxu3 }
  0xb6   :  { %253 = vst.msk [vmem:[%s525_s3 + $0x24] sm:$0xf] %vm243_vm0, %v236_v63  ;;  %v181_v5 = vadd.f32 %v440_v16, %v180_v3  ;;  %v191_v6 = vadd.f32 %v440_v16, %v190_v4  ;;  %v162_v7 = vpop.f32.mrf.mxu0  ;;  %v172_v8 = vpop.f32.mrf.mxu1 }
  0xb7   :  { %257 = vst.msk [vmem:[%s525_s3 + $0x34] sm:$0xf] %vm243_vm0, %v240_v0  ;;  %v163_v9 = vadd.f32 %v440_v16, %v162_v7  ;;  %v173_v10 = vadd.f32 %v440_v16, %v172_v8 }
  0xb8   :  { %246 = vst.msk [vmem:[%s525_s3 + $0x8] sm:$0xf] %vm243_vm0, %v229_v1  ;;  %v205_v11 = vmul.f32 0.2, %v181_v5  ;;  %v209_v12 = vmul.f32 0.2, %v191_v6 }
  0xb9   :  { %250 = vst.msk [vmem:[%s525_s3 + $0x18] sm:$0xf] %vm243_vm0, %v233_v2  ;;  %v198_v13 = vmul.f32 0.2, %v163_v9  ;;  %v202_v14 = vmul.f32 0.2, %v173_v10 }
  0xba   :  { %v221_v15 = vmax.f32 %v181_v5, %v205_v11  ;;  %v225_v17 = vmax.f32 %v191_v6, %v209_v12 }
  0xbb   :  { %v214_v18 = vmax.f32 %v163_v9, %v198_v13  ;;  %v218_v19 = vmax.f32 %v173_v10, %v202_v14 }
  0xbc   :  { %v237_v20 = vpack.c.bf16 %v221_v15, %v221_v15  ;;  %v241_v21 = vpack.c.bf16 %v225_v17, %v225_v17 }
  0xbd   :  { %v230_v22 = vpack.c.bf16 %v214_v18, %v214_v18  ;;  %v234_v23 = vpack.c.bf16 %v218_v19, %v218_v19  ;;  %v182_v24 = vpop.f32.mrf.mxu2  ;;  %v192_v25 = vpop.f32.mrf.mxu3 }
  0xbe   :  { %254 = vst.msk [vmem:[%s525_s3 + $0x28] sm:$0xf] %vm243_vm0, %v237_v20  ;;  %v183_v26 = vadd.f32 %v440_v16, %v182_v24  ;;  %v193_v27 = vadd.f32 %v440_v16, %v192_v25 }
  0xbf   :  { %258 = vst.msk [vmem:[%s525_s3 + $0x38] sm:$0xf] %vm243_vm0, %v241_v21 }
  0xc0   :  { %247 = vst.msk [vmem:[%s525_s3 + $0xc] sm:$0xf] %vm243_vm0, %v230_v22  ;;  %v206_v28 = vmul.f32 0.2, %v183_v26  ;;  %v210_v29 = vmul.f32 0.2, %v193_v27 }
  0xc1   :  { %251 = vst.msk [vmem:[%s525_s3 + $0x1c] sm:$0xf] %vm243_vm0, %v234_v23 }
  0xc2   :  { %v222_v30 = vmax.f32 %v183_v26, %v206_v28  ;;  %v226_v31 = vmax.f32 %v193_v27, %v210_v29 }
  0xc4   :  { %v238_v16 = vpack.c.bf16 %v222_v30, %v222_v30  ;;  %v242_v32 = vpack.c.bf16 %v226_v31, %v226_v31 }
  0xc6   :  { %255 = vst.msk [vmem:[%s525_s3 + $0x2c] sm:$0xf] %vm243_vm0, %v238_v16 }
  0xc7   :  { %259 = vst.msk [vmem:[%s525_s3 + $0x3c] sm:$0xf] %vm243_vm0, %v242_v32 }

// kernel: netD_forward.7
= control target key start
LH: loop header
LB: loop body
LE: loop exit
PB: predicated region body
PF: predicated region fallthrough
CT: control target
= control target key end

     0   :  { %vm220_vm0 = vcmask 257024   ;;  %s457_s1 = inlined_call_operand.vmem [shape: bf16[256,32], index: 1, kind: input, shape index: {}]   ;;  %s458_s2 = inlined_call_operand.vmem [shape: f32[1,32], index: 2, kind: input, shape index: {}]   ;;  %s459_s0 = inlined_call_operand.vmem [shape: bf16[32,256], index: 0, kind: input, shape index: {}]   ;;  %s460_s3 = inlined_call_operand.vmem [shape: bf16[32,32], index: 3, kind: output, shape index: {}]  }
   0x1   :  { %v320_v0 = vld [vmem:[%s457_s1 + $0x38] sm:$0xff]  ;;  %v319_v2 = vld [vmem:[%s457_s1 + $0x30] sm:$0xff]  ;;  %v318_v4 = vld [vmem:[%s457_s1 + $0x28] sm:$0xff] }
   0x2   :  { %v328_v1 = vld [vmem:[%s457_s1 + $0x78] sm:$0xff]  ;;  %170 = vmatpush.bf16.msra.mxu0 %v320_v0  ;;  %329 = vmatpush.bf16.msra.mxu2 %v320_v0  ;;  %v327_v3 = vld [vmem:[%s457_s1 + $0x70] sm:$0xff]  ;;  %v326_v5 = vld [vmem:[%s457_s1 + $0x68] sm:$0xff] }
   0x3   :  { %189 = vmatpush.bf16.msra.mxu1 %v328_v1  ;;  %337 = vmatpush.bf16.msra.mxu3 %v328_v1  ;;  %v317_v6 = vld [vmem:[%s457_s1 + $0x20] sm:$0xff]  ;;  %v316_v8 = vld [vmem:[%s457_s1 + $0x18] sm:$0xff]  ;;  %v315_v10 = vld [vmem:[%s457_s1 + $0x10] sm:$0xff] }
   0x4   :  { %v325_v7 = vld [vmem:[%s457_s1 + $0x60] sm:$0xff]  ;;  %v324_v9 = vld [vmem:[%s457_s1 + $0x58] sm:$0xff]  ;;  %v323_v11 = vld [vmem:[%s457_s1 + $0x50] sm:$0xff] }
   0x5   :  { %v314_v12 = vld [vmem:[%s457_s1 + $0x8] sm:$0xff]  ;;  %v313_v14 = vld [vmem:[%s457_s1] sm:$0xff]  ;;  %v239_v18 = vld [vmem:[%s459_s0 + $0x10] sm:$0xf] }
   0x6   :  { %171 = vmatpush.bf16.msra.mxu0 %v319_v2  ;;  %330 = vmatpush.bf16.msra.mxu2 %v319_v2  ;;  %v322_v13 = vld [vmem:[%s457_s1 + $0x48] sm:$0xff]  ;;  %v321_v15 = vld [vmem:[%s457_s1 + $0x40] sm:$0xff]  ;;  %v312_v19 = vld [vmem:[%s459_s0 + $0x14] sm:$0xf0] }
   0x7   :  { %190 = vmatpush.bf16.msra.mxu1 %v327_v3  ;;  %338 = vmatpush.bf16.msra.mxu3 %v327_v3  ;;  %v231_v16 = vld [vmem:[%s459_s0] sm:$0xf]  ;;  %v310_v17 = vld [vmem:[%s459_s0 + $0x4] sm:$0xf0]  ;;  %v309_v20 = vld [vmem:[%s459_s0 + $0x4] sm:$0xf]  ;;  %v240_v25 = vor.u32 %v312_v19, %v239_v18 }
   0x8   :  { %v233_v21 = vld [vmem:[%s459_s0 + $0x8] sm:$0xf0]  ;;  %v311_v22 = vld [vmem:[%s459_s0 + $0x14] sm:$0xf]  ;;  %v241_v23 = vld [vmem:[%s459_s0 + $0x18] sm:$0xf0]  ;;  %v232_v24 = vor.u32 %v310_v17, %v231_v16 }
   0x9   :  { %v236_v26 = vor.u32 %v309_v20, %v233_v21  ;;  %v244_v27 = vor.u32 %v311_v22, %v241_v23  ;;  %v345_v28 = vld [vmem:[%s458_s2] ss:$0 sm:$0xff] }
   0xa   :  { %172 = vmatpush.bf16.msra.mxu0 %v318_v4  ;;  %331 = vmatpush.bf16.msra.mxu2 %v318_v4 }
   0xb   :  { %191 = vmatpush.bf16.msra.mxu1 %v326_v5  ;;  %339 = vmatpush.bf16.msra.mxu3 %v326_v5 }
   0xe   :  { %173 = vmatpush.bf16.msra.mxu0 %v317_v6  ;;  %332 = vmatpush.bf16.msra.mxu2 %v317_v6 }
   0xf   :  { %192 = vmatpush.bf16.msra.mxu1 %v325_v7  ;;  %340 = vmatpush.bf16.msra.mxu3 %v325_v7 }
  0x12   :  { %174 = vmatpush.bf16.msra.mxu0 %v316_v8  ;;  %333 = vmatpush.bf16.msra.mxu2 %v316_v8 }
  0x13   :  { %193 = vmatpush.bf16.msra.mxu1 %v324_v9  ;;  %341 = vmatpush.bf16.msra.mxu3 %v324_v9 }
  0x16   :  { %175 = vmatpush.bf16.msra.mxu0 %v315_v10  ;;  %334 = vmatpush.bf16.msra.mxu2 %v315_v10 }
  0x17   :  { %194 = vmatpush.bf16.msra.mxu1 %v323_v11  ;;  %342 = vmatpush.bf16.msra.mxu3 %v323_v11 }
  0x1a   :  { %176 = vmatpush.bf16.msra.mxu0 %v314_v12  ;;  %335 = vmatpush.bf16.msra.mxu2 %v314_v12 }
  0x1b   :  { %195 = vmatpush.bf16.msra.mxu1 %v322_v13  ;;  %343 = vmatpush.bf16.msra.mxu3 %v322_v13 }
  0x1e   :  { %177 = vmatpush.bf16.msra.mxu0 %v313_v14  ;;  %336 = vmatpush.bf16.msra.mxu2 %v313_v14 }
  0x1f   :  { %196 = vmatpush.bf16.msra.mxu1 %v321_v15  ;;  %344 = vmatpush.bf16.msra.mxu3 %v321_v15 }
  0x21   :  { %178 = vmatmul.bf16.vlgmr.msra.gmra.mxu0 %v232_v24  ;;  %183 = vmatmul.bf16.vlgmr.msra.gmra.mxu2 %v240_v25 }
  0x22   :  { %197 = vmatmul.bf16.vlgmr.msra.gmra.mxu1 %v236_v26  ;;  %202 = vmatmul.bf16.vlgmr.msra.gmra.mxu3 %v244_v27 }
  0x9e   :  { %v179_v29 = vpop.f32.mrf.mxu0 }
  0x9f   :  { %v180_v30 = vadd.f32 %v345_v28, %v179_v29  ;;  %v198_v31 = vpop.f32.mrf.mxu1 }
  0xa1   :  { %v199_v32 = vadd.f32 %v198_v31, %v180_v30 }
  0xa3   :  { %v208_v33 = vmul.f32 0.2, %v199_v32 }
  0xa4   :  { %v184_v34 = vpop.f32.mrf.mxu2 }
  0xa5   :  { %v212_v35 = vmax.f32 %v199_v32, %v208_v33  ;;  %v185_v36 = vadd.f32 %v345_v28, %v184_v34  ;;  %v203_v37 = vpop.f32.mrf.mxu3 }
  0xa6   :  { %v181_v38 = vpop.f32.mrf.mxu0 }
  0xa7   :  { %v216_v39 = vpack.c.bf16 %v212_v35, %v212_v35  ;;  %v204_v40 = vadd.f32 %v203_v37, %v185_v36  ;;  %v182_v41 = vadd.f32 %v345_v28, %v181_v38  ;;  %v200_v42 = vpop.f32.mrf.mxu1 }
  0xa9   :  { %221 = vst.msk [vmem:[%s460_s3] sm:$0xf] %vm220_vm0, %v216_v39  ;;  %v210_v43 = vmul.f32 0.2, %v204_v40  ;;  %v201_v44 = vadd.f32 %v200_v42, %v182_v41 }
  0xab   :  { %v214_v45 = vmax.f32 %v204_v40, %v210_v43  ;;  %v209_v46 = vmul.f32 0.2, %v201_v44 }
  0xac   :  { %v186_v47 = vpop.f32.mrf.mxu2 }
  0xad   :  { %v218_v48 = vpack.c.bf16 %v214_v45, %v214_v45  ;;  %v213_v49 = vmax.f32 %v201_v44, %v209_v46  ;;  %v187_v50 = vadd.f32 %v345_v28, %v186_v47  ;;  %v205_v51 = vpop.f32.mrf.mxu3 }
  0xaf   :  { %223 = vst.msk [vmem:[%s460_s3 + $0x8] sm:$0xf] %vm220_vm0, %v218_v48  ;;  %v217_v52 = vpack.c.bf16 %v213_v49, %v213_v49  ;;  %v206_v53 = vadd.f32 %v205_v51, %v187_v50 }
  0xb1   :  { %222 = vst.msk [vmem:[%s460_s3 + $0x4] sm:$0xf] %vm220_vm0, %v217_v52  ;;  %v211_v54 = vmul.f32 0.2, %v206_v53 }
  0xb3   :  { %v215_v55 = vmax.f32 %v206_v53, %v211_v54 }
  0xb5   :  { %v219_v56 = vpack.c.bf16 %v215_v55, %v215_v55 }
  0xb7   :  { %224 = vst.msk [vmem:[%s460_s3 + $0xc] sm:$0xf] %vm220_vm0, %v219_v56 }

// kernel: netD_forward.8
= control target key start
LH: loop header
LB: loop body
LE: loop exit
PB: predicated region body
PF: predicated region fallthrough
CT: control target
= control target key end

     0   :  { %vm395_vm0 = vcmask 519168   ;;  %vm398_vm1 = vcmask 516096   ;;  %s745_s1 = inlined_call_operand.vmem [shape: bf16[512,64], index: 1, kind: input, shape index: {}]   ;;  %s746_s2 = inlined_call_operand.vmem [shape: f32[1,64], index: 2, kind: input, shape index: {}]   ;;  %s747_s0 = inlined_call_operand.vmem [shape: bf16[18,512], index: 0, kind: input, shape index: {}]   ;;  %s748_s3 = inlined_call_operand.vmem [shape: bf16[18,64], index: 3, kind: output, shape index: {}]  }
   0x1   :  { %v559_v0 = vld [vmem:[%s745_s1 + $0x38] sm:$0xff]  ;;  %v558_v4 = vld [vmem:[%s745_s1 + $0x30] sm:$0xff]  ;;  %v557_v8 = vld [vmem:[%s745_s1 + $0x28] sm:$0xff] }
   0x2   :  { %v567_v1 = vld [vmem:[%s745_s1 + $0x78] sm:$0xff]  ;;  %314 = vmatpush.bf16.msra.mxu0 %v559_v0  ;;  %v566_v5 = vld [vmem:[%s745_s1 + $0x70] sm:$0xff]  ;;  %v565_v9 = vld [vmem:[%s745_s1 + $0x68] sm:$0xff] }
   0x3   :  { %v575_v2 = vld [vmem:[%s745_s1 + $0xb8] sm:$0xff]  ;;  %332 = vmatpush.bf16.msra.mxu1 %v567_v1  ;;  %v574_v6 = vld [vmem:[%s745_s1 + $0xb0] sm:$0xff]  ;;  %v573_v10 = vld [vmem:[%s745_s1 + $0xa8] sm:$0xff] }
   0x4   :  { %v583_v3 = vld [vmem:[%s745_s1 + $0xf8] sm:$0xff]  ;;  %350 = vmatpush.bf16.msra.mxu2 %v575_v2  ;;  %v582_v7 = vld [vmem:[%s745_s1 + $0xf0] sm:$0xff]  ;;  %v581_v11 = vld [vmem:[%s745_s1 + $0xe8] sm:$0xff] }
   0x5   :  { %368 = vmatpush.bf16.msra.mxu3 %v583_v3  ;;  %v556_v12 = vld [vmem:[%s745_s1 + $0x20] sm:$0xff]  ;;  %v555_v16 = vld [vmem:[%s745_s1 + $0x18] sm:$0xff]  ;;  %v554_v20 = vld [vmem:[%s745_s1 + $0x10] sm:$0xff] }
   0x6   :  { %315 = vmatpush.bf16.msra.mxu0 %v558_v4  ;;  %v564_v13 = vld [vmem:[%s745_s1 + $0x60] sm:$0xff]  ;;  %v563_v17 = vld [vmem:[%s745_s1 + $0x58] sm:$0xff]  ;;  %v562_v21 = vld [vmem:[%s745_s1 + $0x50] sm:$0xff] }
   0x7   :  { %333 = vmatpush.bf16.msra.mxu1 %v566_v5  ;;  %v572_v14 = vld [vmem:[%s745_s1 + $0xa0] sm:$0xff]  ;;  %v571_v18 = vld [vmem:[%s745_s1 + $0x98] sm:$0xff]  ;;  %v570_v22 = vld [vmem:[%s745_s1 + $0x90] sm:$0xff] }
   0x8   :  { %351 = vmatpush.bf16.msra.mxu2 %v574_v6  ;;  %v580_v15 = vld [vmem:[%s745_s1 + $0xe0] sm:$0xff]  ;;  %v579_v19 = vld [vmem:[%s745_s1 + $0xd8] sm:$0xff]  ;;  %v578_v23 = vld [vmem:[%s745_s1 + $0xd0] sm:$0xff] }
   0x9   :  { %369 = vmatpush.bf16.msra.mxu3 %v582_v7  ;;  %v553_v24 = vld [vmem:[%s745_s1 + $0x8] sm:$0xff]  ;;  %v552_v28 = vld [vmem:[%s745_s1] sm:$0xff]  ;;  %v550_v33 = vld [vmem:[%s747_s0 + $0xc] sm:$0xf0] }
   0xa   :  { %316 = vmatpush.bf16.msra.mxu0 %v557_v8  ;;  %v561_v25 = vld [vmem:[%s745_s1 + $0x48] sm:$0xff]  ;;  %v560_v29 = vld [vmem:[%s745_s1 + $0x40] sm:$0xff]  ;;  %v408_v35 = vld [vmem:[%s747_s0 + $0x10] sm:$0xf0] }
   0xb   :  { %334 = vmatpush.bf16.msra.mxu1 %v565_v9  ;;  %v569_v26 = vld [vmem:[%s745_s1 + $0x88] sm:$0xff]  ;;  %v568_v30 = vld [vmem:[%s745_s1 + $0x80] sm:$0xff]  ;;  %v551_v37 = vld [vmem:[%s747_s0 + $0x14] sm:$0xf0] }
   0xc   :  { %352 = vmatpush.bf16.msra.mxu2 %v573_v10  ;;  %v577_v27 = vld [vmem:[%s745_s1 + $0xc8] sm:$0xff]  ;;  %v576_v31 = vld [vmem:[%s745_s1 + $0xc0] sm:$0xff]  ;;  %v416_v39 = vld [vmem:[%s747_s0 + $0x18] sm:$0xf0] }
   0xd   :  { %370 = vmatpush.bf16.msra.mxu3 %v581_v11  ;;  %v406_v32 = vld [vmem:[%s747_s0] sm:$0xf]  ;;  %v548_v34 = vld [vmem:[%s747_s0 + $0x4] sm:$0xf]  ;;  %v414_v36 = vld [vmem:[%s747_s0 + $0x8] sm:$0xf] }
   0xe   :  { %317 = vmatpush.bf16.msra.mxu0 %v556_v12  ;;  %v549_v38 = vld [vmem:[%s747_s0 + $0xc] sm:$0xf]  ;;  %v407_v40 = vor.u32 %v550_v33, %v406_v32  ;;  %v411_v41 = vor.u32 %v548_v34, %v408_v35  ;;  %v415_v42 = vor.u32 %v551_v37, %v414_v36  ;;  %v18_v44 = vld [vmem:[%s747_s0 + $0x20] sm:$0x11] }
   0xf   :  { %335 = vmatpush.bf16.msra.mxu1 %v564_v13  ;;  %v419_v43 = vor.u32 %v549_v38, %v416_v39  ;;  %v19_v45 = vld [vmem:[%s747_s0 + $0x28] sm:$0x11]  ;;  %v102_v46 = vunpack.c.l.b16 %v18_v44  ;;  %v103_v47 = vunpack.c.h.b16 %v18_v44  ;;  %v584_v54 = vld [vmem:[%s746_s2] ss:$0 sm:$0xff] }
  0x10   :  { %353 = vmatpush.bf16.msra.mxu2 %v572_v14  ;;  %v104_v48 = vunpack.c.l.b16 %v19_v45  ;;  %v105_v49 = vunpack.c.h.b16 %v19_v45 }
  0x11   :  { %371 = vmatpush.bf16.msra.mxu3 %v580_v15  ;;  %v110_v50 = vpack.c.b16 %v102_v46, %v102_v46  ;;  %v111_v51 = vpack.c.b16 %v103_v47, %v103_v47 }
  0x12   :  { %318 = vmatpush.bf16.msra.mxu0 %v555_v16  ;;  %v112_v52 = vpack.c.b16 %v104_v48, %v104_v48  ;;  %v113_v53 = vpack.c.b16 %v105_v49, %v105_v49 }
  0x13   :  { %336 = vmatpush.bf16.msra.mxu1 %v563_v17 }
  0x14   :  { %354 = vmatpush.bf16.msra.mxu2 %v571_v18 }
  0x15   :  { %372 = vmatpush.bf16.msra.mxu3 %v579_v19 }
  0x16   :  { %319 = vmatpush.bf16.msra.mxu0 %v554_v20 }
  0x17   :  { %337 = vmatpush.bf16.msra.mxu1 %v562_v21 }
  0x18   :  { %355 = vmatpush.bf16.msra.mxu2 %v570_v22 }
  0x19   :  { %373 = vmatpush.bf16.msra.mxu3 %v578_v23 }
  0x1a   :  { %320 = vmatpush.bf16.msra.mxu0 %v553_v24 }
  0x1b   :  { %338 = vmatpush.bf16.msra.mxu1 %v561_v25 }
  0x1c   :  { %356 = vmatpush.bf16.msra.mxu2 %v569_v26 }
  0x1d   :  { %374 = vmatpush.bf16.msra.mxu3 %v577_v27 }
  0x1e   :  { %321 = vmatpush.bf16.msra.mxu0 %v552_v28 }
  0x1f   :  { %339 = vmatpush.bf16.msra.mxu1 %v560_v29 }
  0x20   :  { %357 = vmatpush.bf16.msra.mxu2 %v568_v30 }
  0x21   :  { %375 = vmatpush.bf16.msra.mxu3 %v576_v31  ;;  %322 = vmatmul.bf16.vlgmr.msra.gmra.mxu0 %v407_v40 }
  0x22   :  { %340 = vmatmul.bf16.vlgmr.msra.gmra.mxu1 %v411_v41 }
  0x23   :  { %358 = vmatmul.bf16.vlgmr.msra.gmra.mxu2 %v415_v42 }
  0x24   :  { %376 = vmatmul.bf16.vlgmr.msra.gmra.mxu3 %v419_v43 }
  0x31   :  { %327 = vmatmul.bf16.gmra.mxu0 %v110_v50 }
  0x32   :  { %345 = vmatmul.bf16.gmra.mxu1 %v111_v51 }
  0x33   :  { %363 = vmatmul.bf16.gmra.mxu2 %v112_v52 }
  0x34   :  { %381 = vmatmul.bf16.gmra.mxu3 %v113_v53 }
  0x9e   :  { %v323_v55 = vpop.f32.mrf.mxu0 }
  0x9f   :  { %v341_v56 = vpop.f32.mrf.mxu1  ;;  %v324_v57 = vadd.f32 %v584_v54, %v323_v55 }
  0xa1   :  { %v342_v58 = vadd.f32 %v341_v56, %v324_v57 }
  0xa6   :  { %v359_v59 = vpop.f32.mrf.mxu2  ;;  %v325_v62 = vpop.f32.mrf.mxu0 }
  0xa7   :  { %v377_v60 = vpop.f32.mrf.mxu3  ;;  %v360_v61 = vadd.f32 %v359_v59, %v342_v58  ;;  %v343_v63 = vpop.f32.mrf.mxu1  ;;  %v326_v1 = vadd.f32 %v584_v54, %v325_v62 }
  0xa9   :  { %v378_v0 = vadd.f32 %v377_v60, %v360_v61  ;;  %v344_v4 = vadd.f32 %v343_v63, %v326_v1 }
  0xab   :  { %v386_v2 = vmul.f32 0.2, %v378_v0 }
  0xad   :  { %v389_v3 = vmax.f32 %v378_v0, %v386_v2 }
  0xae   :  { %v361_v5 = vpop.f32.mrf.mxu2  ;;  %v328_v9 = vpop.f32.mrf.mxu0 }
  0xaf   :  { %v379_v6 = vpop.f32.mrf.mxu3  ;;  %v392_v7 = vpack.c.bf16 %v389_v3, %v389_v3  ;;  %v362_v8 = vadd.f32 %v361_v5, %v344_v4  ;;  %v346_v10 = vpop.f32.mrf.mxu1  ;;  %v329_v11 = vadd.f32 %v584_v54, %v328_v9 }
  0xb1   :  { %396 = vst.msk [vmem:[%s748_s3] sm:$0xf] %vm395_vm0, %v392_v7  ;;  %v380_v12 = vadd.f32 %v379_v6, %v362_v8  ;;  %v347_v14 = vadd.f32 %v346_v10, %v329_v11 }
  0xb3   :  { %v387_v13 = vmul.f32 0.2, %v380_v12 }
  0xb5   :  { %v390_v15 = vmax.f32 %v380_v12, %v387_v13 }
  0xb6   :  { %v364_v16 = vpop.f32.mrf.mxu2  ;;  %v330_v20 = vpop.f32.mrf.mxu0 }
  0xb7   :  { %v382_v17 = vpop.f32.mrf.mxu3  ;;  %v393_v18 = vpack.c.bf16 %v390_v15, %v390_v15  ;;  %v365_v19 = vadd.f32 %v364_v16, %v347_v14  ;;  %v348_v21 = vpop.f32.mrf.mxu1 }
  0xb9   :  { %397 = vst.msk [vmem:[%s748_s3 + $0x4] sm:$0xf] %vm395_vm0, %v393_v18  ;;  %v383_v22 = vadd.f32 %v382_v17, %v365_v19 }
  0xbb   :  { %v388_v23 = vmul.f32 0.2, %v383_v22 }
  0xbd   :  { %v391_v24 = vmax.f32 %v383_v22, %v388_v23 }
  0xbe   :  { %v366_v25 = vpop.f32.mrf.mxu2 }
  0xbf   :  { %v384_v26 = vpop.f32.mrf.mxu3  ;;  %v394_v27 = vpack.c.bf16 %v391_v24, %v391_v24 }
  0xc1   :  { %399 = vst.msk [vmem:[%s748_s3 + $0x8] sm:$0x1] %vm398_vm1, %v394_v27 }

// kernel: netD_forward.9
= control target key start
LH: loop header
LB: loop body
LE: loop exit
PB: predicated region body
PF: predicated region fallthrough
CT: control target
= control target key end

     0   :  { %vm687_vm3 = vcmask 7168   ;;  %s1248_s1 = inlined_call_operand.vmem [shape: bf16[1024,1], index: 1, kind: input, shape index: {}]   ;;  %s1249_s0 = inlined_call_operand.vmem [shape: bf16[8,1024], index: 0, kind: input, shape index: {}]   ;;  %s1250_s2 = inlined_call_operand.<no memory space> [shape: f32[1,1], index: 2, kind: input, shape index: {}]   ;;  %s1251_s3 = inlined_call_operand.vmem [shape: f32[8,1], index: 3, kind: output, shape index: {}]  }
   0x1   :  { %v956_v0 = vld [vmem:[%s1248_s1 + $0x38] sm:$0xff]  ;;  %v955_v4 = vld [vmem:[%s1248_s1 + $0x30] sm:$0xff]  ;;  %v954_v8 = vld [vmem:[%s1248_s1 + $0x28] sm:$0xff]  ;;  %v8_v48 = vstv %s1250_s2 }
   0x2   :  { %v964_v1 = vld [vmem:[%s1248_s1 + $0x78] sm:$0xff]  ;;  %564 = vmatpush.bf16.msra.mxu0 %v956_v0  ;;  %v963_v5 = vld [vmem:[%s1248_s1 + $0x70] sm:$0xff]  ;;  %v962_v9 = vld [vmem:[%s1248_s1 + $0x68] sm:$0xff]  ;;  %9 = vst [vmem:[#allocation2] sm:$0x1] %v8_v48 }
   0x3   :  { %v972_v2 = vld [vmem:[%s1248_s1 + $0xb8] sm:$0xff]  ;;  %577 = vmatpush.bf16.msra.mxu1 %v964_v1  ;;  %v971_v6 = vld [vmem:[%s1248_s1 + $0xb0] sm:$0xff]  ;;  %v970_v10 = vld [vmem:[%s1248_s1 + $0xa8] sm:$0xff] }
   0x4   :  { %v980_v3 = vld [vmem:[%s1248_s1 + $0xf8] sm:$0xff]  ;;  %590 = vmatpush.bf16.msra.mxu2 %v972_v2  ;;  %v979_v7 = vld [vmem:[%s1248_s1 + $0xf0] sm:$0xff]  ;;  %v978_v11 = vld [vmem:[%s1248_s1 + $0xe8] sm:$0xff] }
   0x5   :  { %603 = vmatpush.bf16.msra.mxu3 %v980_v3  ;;  %v953_v12 = vld [vmem:[%s1248_s1 + $0x20] sm:$0xff]  ;;  %v952_v16 = vld [vmem:[%s1248_s1 + $0x18] sm:$0xff]  ;;  %v951_v20 = vld [vmem:[%s1248_s1 + $0x10] sm:$0xff] }
   0x6   :  { %565 = vmatpush.bf16.msra.mxu0 %v955_v4  ;;  %v961_v13 = vld [vmem:[%s1248_s1 + $0x60] sm:$0xff]  ;;  %v960_v17 = vld [vmem:[%s1248_s1 + $0x58] sm:$0xff]  ;;  %v959_v21 = vld [vmem:[%s1248_s1 + $0x50] sm:$0xff] }
   0x7   :  { %578 = vmatpush.bf16.msra.mxu1 %v963_v5  ;;  %v969_v14 = vld [vmem:[%s1248_s1 + $0xa0] sm:$0xff]  ;;  %v968_v18 = vld [vmem:[%s1248_s1 + $0x98] sm:$0xff]  ;;  %v967_v22 = vld [vmem:[%s1248_s1 + $0x90] sm:$0xff] }
   0x8   :  { %591 = vmatpush.bf16.msra.mxu2 %v971_v6  ;;  %v977_v15 = vld [vmem:[%s1248_s1 + $0xe0] sm:$0xff]  ;;  %v976_v19 = vld [vmem:[%s1248_s1 + $0xd8] sm:$0xff]  ;;  %v975_v23 = vld [vmem:[%s1248_s1 + $0xd0] sm:$0xff] }
   0x9   :  { %604 = vmatpush.bf16.msra.mxu3 %v979_v7  ;;  %v950_v24 = vld [vmem:[%s1248_s1 + $0x8] sm:$0xff]  ;;  %v16_v29 = vld [vmem:[%s1249_s0] sm:$0xff]  ;;  %v988_v38 = vld [vmem:[%s1248_s1 + $0x138] sm:$0xff] }
   0xa   :  { %566 = vmatpush.bf16.msra.mxu0 %v954_v8  ;;  %v958_v25 = vld [vmem:[%s1248_s1 + $0x48] sm:$0xff]  ;;  %v949_v30 = vld [vmem:[%s1248_s1] sm:$0xff]  ;;  %v156_v33 = vunpack.c.l.b16 %v16_v29  ;;  %v157_v37 = vunpack.c.h.b16 %v16_v29  ;;  %v996_v39 = vld [vmem:[%s1248_s1 + $0x178] sm:$0xff] }
   0xb   :  { %579 = vmatpush.bf16.msra.mxu1 %v962_v9  ;;  %v966_v26 = vld [vmem:[%s1248_s1 + $0x88] sm:$0xff]  ;;  %v957_v31 = vld [vmem:[%s1248_s1 + $0x40] sm:$0xff]  ;;  %v1004_v40 = vld [vmem:[%s1248_s1 + $0x1b8] sm:$0xff] }
   0xc   :  { %592 = vmatpush.bf16.msra.mxu2 %v970_v10  ;;  %v974_v27 = vld [vmem:[%s1248_s1 + $0xc8] sm:$0xff]  ;;  %v965_v34 = vld [vmem:[%s1248_s1 + $0x80] sm:$0xff]  ;;  %v1012_v41 = vld [vmem:[%s1248_s1 + $0x1f8] sm:$0xff]  ;;  %v164_v43 = vpack.c.b16 %v156_v33, %v156_v33  ;;  %v165_v45 = vpack.c.b16 %v157_v37, %v157_v37 }
   0xd   :  { %605 = vmatpush.bf16.msra.mxu3 %v978_v11  ;;  %v17_v28 = vld [vmem:[%s1249_s0 + $0x8] sm:$0xff]  ;;  %v973_v35 = vld [vmem:[%s1248_s1 + $0xc0] sm:$0xff]  ;;  %v987_v46 = vld [vmem:[%s1248_s1 + $0x130] sm:$0xff] }
   0xe   :  { %567 = vmatpush.bf16.msra.mxu0 %v953_v12  ;;  %v158_v32 = vunpack.c.l.b16 %v17_v28  ;;  %v159_v36 = vunpack.c.h.b16 %v17_v28  ;;  %v995_v47 = vld [vmem:[%s1248_s1 + $0x170] sm:$0xff]  ;;  %v986_v51 = vld [vmem:[%s1248_s1 + $0x128] sm:$0xff]  ;;  %v985_v55 = vld [vmem:[%s1248_s1 + $0x120] sm:$0xff] }
   0xf   :  { %580 = vmatpush.bf16.msra.mxu1 %v961_v13  ;;  %v1003_v49 = vld [vmem:[%s1248_s1 + $0x1b0] sm:$0xff]  ;;  %v994_v52 = vld [vmem:[%s1248_s1 + $0x168] sm:$0xff]  ;;  %v993_v56 = vld [vmem:[%s1248_s1 + $0x160] sm:$0xff] }
  0x10   :  { %593 = vmatpush.bf16.msra.mxu2 %v969_v14  ;;  %v166_v42 = vpack.c.b16 %v158_v32, %v158_v32  ;;  %v167_v44 = vpack.c.b16 %v159_v36, %v159_v36  ;;  %v1011_v50 = vld [vmem:[%s1248_s1 + $0x1f0] sm:$0xff]  ;;  %v1002_v53 = vld [vmem:[%s1248_s1 + $0x1a8] sm:$0xff]  ;;  %v1001_v57 = vld [vmem:[%s1248_s1 + $0x1a0] sm:$0xff] }
  0x11   :  { %606 = vmatpush.bf16.msra.mxu3 %v977_v15  ;;  %v1010_v54 = vld [vmem:[%s1248_s1 + $0x1e8] sm:$0xff]  ;;  %v1009_v58 = vld [vmem:[%s1248_s1 + $0x1e0] sm:$0xff]  ;;  %v984_v59 = vld [vmem:[%s1248_s1 + $0x118] sm:$0xff] }
  0x12   :  { %568 = vmatpush.bf16.msra.mxu0 %v952_v16  ;;  %v992_v60 = vld [vmem:[%s1248_s1 + $0x158] sm:$0xff]  ;;  %v983_v63 = vld [vmem:[%s1248_s1 + $0x110] sm:$0xff]  ;;  %v982_v3 = vld [vmem:[%s1248_s1 + $0x108] sm:$0xff] }
  0x13   :  { %581 = vmatpush.bf16.msra.mxu1 %v960_v17  ;;  %v1000_v61 = vld [vmem:[%s1248_s1 + $0x198] sm:$0xff]  ;;  %v991_v0 = vld [vmem:[%s1248_s1 + $0x150] sm:$0xff]  ;;  %v990_v4 = vld [vmem:[%s1248_s1 + $0x148] sm:$0xff] }
  0x14   :  { %594 = vmatpush.bf16.msra.mxu2 %v968_v18  ;;  %v1008_v62 = vld [vmem:[%s1248_s1 + $0x1d8] sm:$0xff]  ;;  %v999_v1 = vld [vmem:[%s1248_s1 + $0x190] sm:$0xff]  ;;  %v998_v6 = vld [vmem:[%s1248_s1 + $0x188] sm:$0xff] }
  0x15   :  { %607 = vmatpush.bf16.msra.mxu3 %v976_v19  ;;  %v1007_v2 = vld [vmem:[%s1248_s1 + $0x1d0] sm:$0xff]  ;;  %v1006_v7 = vld [vmem:[%s1248_s1 + $0x1c8] sm:$0xff]  ;;  %v19_v8 = vld [vmem:[%s1249_s0 + $0x18] sm:$0xff] }
  0x16   :  { %569 = vmatpush.bf16.msra.mxu0 %v951_v20  ;;  %v18_v5 = vld [vmem:[%s1249_s0 + $0x10] sm:$0xff]  ;;  %v981_v11 = vld [vmem:[%s1248_s1 + $0x100] sm:$0xff]  ;;  %v162_v13 = vunpack.c.l.b16 %v19_v8  ;;  %v163_v14 = vunpack.c.h.b16 %v19_v8 }
  0x17   :  { %582 = vmatpush.bf16.msra.mxu1 %v959_v21  ;;  %v160_v9 = vunpack.c.l.b16 %v18_v5  ;;  %v161_v10 = vunpack.c.h.b16 %v18_v5  ;;  %v989_v12 = vld [vmem:[%s1248_s1 + $0x140] sm:$0xff] }
  0x18   :  { %595 = vmatpush.bf16.msra.mxu2 %v967_v22  ;;  %v997_v15 = vld [vmem:[%s1248_s1 + $0x180] sm:$0xff]  ;;  %v170_v19 = vpack.c.b16 %v162_v13, %v162_v13  ;;  %v171_v20 = vpack.c.b16 %v163_v14, %v163_v14 }
  0x19   :  { %608 = vmatpush.bf16.msra.mxu3 %v975_v23  ;;  %v1005_v16 = vld [vmem:[%s1248_s1 + $0x1c0] sm:$0xff]  ;;  %v168_v17 = vpack.c.b16 %v160_v9, %v160_v9  ;;  %v169_v18 = vpack.c.b16 %v161_v10, %v161_v10 }
  0x1a   :  { %570 = vmatpush.bf16.msra.mxu0 %v950_v24 }
  0x1b   :  { %583 = vmatpush.bf16.msra.mxu1 %v958_v25 }
  0x1c   :  { %596 = vmatpush.bf16.msra.mxu2 %v966_v26 }
  0x1d   :  { %609 = vmatpush.bf16.msra.mxu3 %v974_v27  ;;  %v1013_v27 = vld [vmem:[#allocation2] ss:$0 sm:$0xff] }
  0x1e   :  { %571 = vmatpush.bf16.msra.mxu0 %v949_v30 }
  0x1f   :  { %584 = vmatpush.bf16.msra.mxu1 %v957_v31 }
  0x20   :  { %597 = vmatpush.bf16.msra.mxu2 %v965_v34 }
  0x21   :  { %610 = vmatpush.bf16.msra.mxu3 %v973_v35  ;;  %572 = vmatmul.bf16.vlgmr.msra.gmra.mxu0 %v164_v43 }
  0x22   :  { %616 = vmatpush.bf16.msrb.mxu0 %v988_v38  ;;  %585 = vmatmul.bf16.vlgmr.msra.gmra.mxu1 %v165_v45 }
  0x23   :  { %629 = vmatpush.bf16.msrb.mxu1 %v996_v39  ;;  %598 = vmatmul.bf16.vlgmr.msra.gmra.mxu2 %v166_v42 }
  0x24   :  { %642 = vmatpush.bf16.msrb.mxu2 %v1004_v40  ;;  %611 = vmatmul.bf16.vlgmr.msra.gmra.mxu3 %v167_v44 }
  0x25   :  { %655 = vmatpush.bf16.msrb.mxu3 %v1012_v41 }
  0x26   :  { %617 = vmatpush.bf16.msrb.mxu0 %v987_v46 }
  0x27   :  { %630 = vmatpush.bf16.msrb.mxu1 %v995_v47 }
  0x28   :  { %643 = vmatpush.bf16.msrb.mxu2 %v1003_v49 }
  0x29   :  { %656 = vmatpush.bf16.msrb.mxu3 %v1011_v50 }
  0x2a   :  { %618 = vmatpush.bf16.msrb.mxu0 %v986_v51 }
  0x2b   :  { %631 = vmatpush.bf16.msrb.mxu1 %v994_v52 }
  0x2c   :  { %644 = vmatpush.bf16.msrb.mxu2 %v1002_v53 }
  0x2d   :  { %657 = vmatpush.bf16.msrb.mxu3 %v1010_v54 }
  0x2e   :  { %619 = vmatpush.bf16.msrb.mxu0 %v985_v55 }
  0x2f   :  { %632 = vmatpush.bf16.msrb.mxu1 %v993_v56 }
  0x30   :  { %645 = vmatpush.bf16.msrb.mxu2 %v1001_v57 }
  0x31   :  { %658 = vmatpush.bf16.msrb.mxu3 %v1009_v58 }
  0x32   :  { %620 = vmatpush.bf16.msrb.mxu0 %v984_v59 }
  0x33   :  { %633 = vmatpush.bf16.msrb.mxu1 %v992_v60 }
  0x34   :  { %646 = vmatpush.bf16.msrb.mxu2 %v1000_v61 }
  0x35   :  { %659 = vmatpush.bf16.msrb.mxu3 %v1008_v62 }
  0x36   :  { %621 = vmatpush.bf16.msrb.mxu0 %v983_v63 }
  0x37   :  { %634 = vmatpush.bf16.msrb.mxu1 %v991_v0 }
  0x38   :  { %647 = vmatpush.bf16.msrb.mxu2 %v999_v1 }
  0x39   :  { %660 = vmatpush.bf16.msrb.mxu3 %v1007_v2 }
  0x3a   :  { %622 = vmatpush.bf16.msrb.mxu0 %v982_v3 }
  0x3b   :  { %635 = vmatpush.bf16.msrb.mxu1 %v990_v4 }
  0x3c   :  { %648 = vmatpush.bf16.msrb.mxu2 %v998_v6 }
  0x3d   :  { %661 = vmatpush.bf16.msrb.mxu3 %v1006_v7 }
  0x3e   :  { %623 = vmatpush.bf16.msrb.mxu0 %v981_v11 }
  0x3f   :  { %636 = vmatpush.bf16.msrb.mxu1 %v989_v12 }
  0x40   :  { %649 = vmatpush.bf16.msrb.mxu2 %v997_v15 }
  0x41   :  { %662 = vmatpush.bf16.msrb.mxu3 %v1005_v16  ;;  %624 = vmatmul.bf16.vlgmr.msrb.gmra.mxu0 %v168_v17 }
  0x42   :  { %637 = vmatmul.bf16.vlgmr.msrb.gmra.mxu1 %v169_v18 }
  0x43   :  { %650 = vmatmul.bf16.vlgmr.msrb.gmra.mxu2 %v170_v19 }
  0x44   :  { %663 = vmatmul.bf16.vlgmr.msrb.gmra.mxu3 %v171_v20 }
  0x9e   :  { %v573_v21 = vpop.f32.mrf.mxu0 }
  0x9f   :  { %v586_v22 = vpop.f32.mrf.mxu1  ;;  %v574_v30 = vadd.f32 %v1013_v27, %v573_v21 }
  0xa1   :  { %v587_v31 = vadd.f32 %v586_v22, %v574_v30 }
  0xa6   :  { %v599_v23 = vpop.f32.mrf.mxu2  ;;  %v575_v25 = vpop.f32.mrf.mxu0 }
  0xa7   :  { %v612_v24 = vpop.f32.mrf.mxu3  ;;  %v588_v26 = vpop.f32.mrf.mxu1  ;;  %v600_v32 = vadd.f32 %v599_v23, %v587_v31 }
  0xa9   :  { %v613_v33 = vadd.f32 %v612_v24, %v600_v32 }
  0xae   :  { %v601_v28 = vpop.f32.mrf.mxu2 }
  0xaf   :  { %v614_v29 = vpop.f32.mrf.mxu3 }
  0xbe   :  { %v625_v34 = vpop.f32.mrf.mxu0 }
  0xbf   :  { %v638_v35 = vpop.f32.mrf.mxu1  ;;  %v626_v36 = vadd.f32 %v625_v34, %v613_v33 }
  0xc1   :  { %v639_v37 = vadd.f32 %v638_v35, %v626_v36 }
  0xc6   :  { %v651_v38 = vpop.f32.mrf.mxu2  ;;  %v627_v41 = vpop.f32.mrf.mxu0 }
  0xc7   :  { %v664_v39 = vpop.f32.mrf.mxu3  ;;  %v652_v40 = vadd.f32 %v651_v38, %v639_v37  ;;  %v640_v42 = vpop.f32.mrf.mxu1 }
  0xc9   :  { %v665_v43 = vadd.f32 %v664_v39, %v652_v40 }
  0xcb   :  { %v668_v44 = vsub.f32 0.0, %v665_v43 }
  0xcd   :  { %v669_v45 = vmul.f32 1.442695, %v668_v44 }
  0xce   :  { %v653_v46 = vpop.f32.mrf.mxu2 }
  0xcf   :  { %v666_v47 = vpop.f32.mrf.mxu3  ;;  %1014 = vpow2.f32 %v669_v45 }
  0xd5   :  { %v1015_v48 = vpop.eup %1014 }
  0xd6   :  { %v671_v49 = vadd.f32 1.0, %v1015_v48 }
  0xd8   :  { %1016 = vrcp.f32 %v671_v49  ;;  %v683_v53 = vand.u32 2147483648, %v671_v49  ;;  %v681_v55 = vand.u32 2147483647, %v671_v49  ;;  %vm677_vm1 = vweird.f32 %v671_v49 }
  0xda   :  { %v684_v57 = vor.u32 1.1754944e-38, %v683_v53  ;;  %vm682_vm4 = vcmp.eq.f32.partialorder %v681_v55, 8.507059e+37 }
  0xde   :  { %v1017_v50 = vpop.eup %1016 }
  0xdf   :  { %v673_v51 = vmul.f32 %v1017_v50, %v671_v49  ;;  %vm678_vm0 = vweird.f32 %v1017_v50 }
  0xe0   :  { %vm679_vm2 = vmor %vm677_vm1, %vm678_vm0 }
  0xe1   :  { %v674_v52 = vsub.f32 1.0, %v673_v51 }
  0xe3   :  { %v675_v54 = vmul.f32 %v1017_v50, %v674_v52 }
  0xe5   :  { %v676_v56 = vadd.f32 %v1017_v50, %v675_v54 }
  0xe7   :  { %v680_v58 = vsel %vm679_vm2, %v1017_v50, %v676_v56 }
  0xe8   :  { %v685_v59 = vsel %vm682_vm4, %v684_v57, %v680_v58 }
  0xe9   :  { %688 = vst.msk [vmem:[%s1251_s3] sm:$0xff] %vm687_vm3, %v685_v59 }

</bundles_post_ra>
